<compile_context>
chip_gen: v5e
topology: v5e:2x2
jax: 0.10.0
libtpu: 0.0.40
codegen_flags: <defaults>
</compile_context>

<pallas_src>
import jax
import jax.numpy as jnp
from jax import lax
from jax.experimental import pallas as pl
from jax.experimental.pallas import tpu as pltpu

_LANE = 128


# ----------------------------- Pallas kernels -----------------------------

def _fused_kernel(x_ref, w_ref, shift_ref, o_ref, acc_ref):
    """o = leaky_relu_0.1( X @ W + shift )   (BN scale pre-folded into W)."""
    k = pl.program_id(1)

    @pl.when(k == 0)
    def _():
        acc_ref[...] = jnp.zeros_like(acc_ref)

    acc_ref[...] += jnp.dot(x_ref[...], w_ref[...],
                            preferred_element_type=jnp.float32)

    @pl.when(k == pl.num_programs(1) - 1)
    def _():
        y = acc_ref[...] + shift_ref[...]
        y = jnp.where(y > 0, y, 0.1 * y)
        o_ref[...] = y.astype(o_ref.dtype)


def _fused_kernel_res(x_ref, w_ref, shift_ref, res_ref, o_ref, acc_ref):
    """o = leaky_relu_0.1( X @ W + shift ) + residual."""
    k = pl.program_id(1)

    @pl.when(k == 0)
    def _():
        acc_ref[...] = jnp.zeros_like(acc_ref)

    acc_ref[...] += jnp.dot(x_ref[...], w_ref[...],
                            preferred_element_type=jnp.float32)

    @pl.when(k == pl.num_programs(1) - 1)
    def _():
        y = acc_ref[...] + shift_ref[...]
        y = jnp.where(y > 0, y, 0.1 * y)
        o_ref[...] = (y + res_ref[...].astype(jnp.float32)).astype(o_ref.dtype)


# ------------------------------ kernel glue --------------------------------

def _round_up(v, m):
    return -(-v // m) * m


def _cpad(c):
    return _round_up(c, _LANE)


def _pick_tk(k):
    """Largest of {512,384,256,128} dividing K; else full K (legal as full
    extent on the last dim — only hit by conv1's K=27)."""
    if k % _LANE == 0:
        for tk in (512, 384, 256, 128):
            if k % tk == 0:
                return tk
    return k


def _pick_tm(m):
    """M tile: <=256 rows, dividing M (M is pre-rounded to a multiple of 8)."""
    if m <= 256:
        return m
    for tm in (256, 128, 64, 32, 16, 8):
        if m % tm == 0:
            return tm
    return m


def _call_fused(patches, w2, shift, residual, out_dtype):
    """patches: (M, K); w2: (K, Cp) scale-folded; shift: (1, Cp) f32;
    residual: (M, Cp) or None.  Returns (M, Cp) in out_dtype."""
    m, k = patches.shape
    cp = w2.shape[1]

    m_pad = _round_up(m, 8)
    if m_pad != m:  # only for tiny tails (e.g. M=2 at 1x1 spatial)
        patches = jnp.pad(patches, ((0, m_pad - m), (0, 0)))
        if residual is not None:
            residual = jnp.pad(residual, ((0, m_pad - m), (0, 0)))

    tm = _pick_tm(m_pad)
    tk = _pick_tk(k)
    grid = (m_pad // tm, k // tk)

    in_specs = [
        pl.BlockSpec((tm, tk), lambda i, j: (i, j)),
        pl.BlockSpec((tk, cp), lambda i, j: (j, 0)),
        pl.BlockSpec((1, cp), lambda i, j: (0, 0)),
    ]
    args = [patches, w2, shift]
    if residual is not None:
        in_specs.append(pl.BlockSpec((tm, cp), lambda i, j: (i, 0)))
        args.append(residual)
        kernel = _fused_kernel_res
    else:
        kernel = _fused_kernel

    out = pl.pallas_call(
        kernel,
        out_shape=jax.ShapeDtypeStruct((m_pad, cp), out_dtype),
        grid_spec=pltpu.PrefetchScalarGridSpec(
            num_scalar_prefetch=0,
            grid=grid,
            in_specs=in_specs,
            out_specs=pl.BlockSpec((tm, cp), lambda i, j: (i, 0)),
            scratch_shapes=[pltpu.VMEM((tm, cp), jnp.float32)],
        ),
        compiler_params=pltpu.CompilerParams(
            # M tiles are independent -> shard across TensorCores (v7x);
            # K is the accumulator axis and must stay sequential.
            dimension_semantics=("parallel", "arbitrary"),
            vmem_limit_bytes=32 << 20,   # actual tile footprint is ~6 MiB
        ),
    )(*args)
    return out[:m] if m_pad != m else out


def _im2col_3x3(x, stride):
    """x: (N, H, W, C) -> (N*Ho*Wo, 9*C), taps ordered (ky, kx, c)."""
    n, h, w, c = x.shape
    xp = jnp.pad(x, ((0, 0), (1, 1), (1, 1), (0, 0)))
    ho = (h + 2 - 3) // stride + 1
    wo = (w + 2 - 3) // stride + 1
    cols = []
    for dy in range(3):
        for dx in range(3):
            cols.append(xp[:, dy:dy + stride * (ho - 1) + 1:stride,
                           dx:dx + stride * (wo - 1) + 1:stride, :])
    patches = jnp.concatenate(cols, axis=-1)
    return patches.reshape(n * ho * wo, 9 * c), (n, ho, wo)


def fused_conv_bn_lrelu(x, p, ksize, stride, residual=None,
                        out_dtype=jnp.bfloat16):
    """x: NHWC with channel-padded (zero) lanes.  Output NHWC, Cout padded to
    a multiple of 128 (pad channels stay exactly zero)."""
    cp = p["w2p"].shape[1]
    if ksize == 3:
        patches, (n, ho, wo) = _im2col_3x3(x, stride)
    else:
        n, h, w, c = x.shape
        patches = x.reshape(n * h * w, c)
        ho, wo = h, w
    res2 = None
    if residual is not None:
        res2 = residual.reshape(n * ho * wo, cp)
    out = _call_fused(patches, p["w2p"], p["shift_p"], res2, out_dtype)
    return out.reshape(n, ho, wo, cp)


# ------------------------------ model params -------------------------------

def _make_conv_bn(key, kh, kw, cin, cout, cin_pad=None):
    """Conv(kh,kw,cin->cout, bias=False) + BatchNorm(cout) folded for
    inference, prepared for the kernel:
       w2p     (kh*kw*cin_pad, cout_pad) bf16, BN scale folded, zero-padded
       shift_p (1, cout_pad) f32
    plus f32 (w4, scale, shift) kept for the pure-JAX reference."""
    if cin_pad is None:
        cin_pad = cin
    cout_pad = _cpad(cout)
    k1, k2, k3 = jax.random.split(key, 3)
    w4 = jax.random.normal(k1, (kh, kw, cin, cout), jnp.float32)
    w4 = w4 * jnp.sqrt(2.0 / float(kh * kw * cin))
    gamma = 1.0 + 0.1 * jax.random.normal(k2, (cout,), jnp.float32)
    beta = 0.1 * jax.random.normal(k3, (cout,), jnp.float32)
    scale = gamma / jnp.sqrt(1.0 + 1e-5)   # running_mean=0, running_var=1
    shift = beta
    folded = (w4 * scale).astype(jnp.bfloat16)
    w2p = jnp.zeros((kh, kw, cin_pad, cout_pad), jnp.bfloat16)
    w2p = w2p.at[:, :, :cin, :cout].set(folded)
    w2p = w2p.reshape(kh * kw * cin_pad, cout_pad)   # (ky,kx,cin) ordering
    shift_p = jnp.zeros((1, cout_pad), jnp.float32).at[0, :cout].set(shift)
    return {"w4": w4, "scale": scale, "shift": shift,
            "w2p": w2p, "shift_p": shift_p}


def init_darknet(key):
    keys = iter(jax.random.split(key, 64))
    params = {"conv1": _make_conv_bn(next(keys), 3, 3, 3, 32, cin_pad=3)}
    in_ch = 32
    layers = []
    for channels, blocks in [(64, 1), (128, 2), (256, 8), (512, 8), (1024, 4)]:
        layer = []
        for _ in range(blocks):
            blk = {}
            if in_ch != channels:
                blk["downsample"] = _make_conv_bn(
                    next(keys), 3, 3, in_ch, channels, cin_pad=_cpad(in_ch))
                in_ch = channels
            else:
                blk["downsample"] = None
            mid = channels // 2
            blk["conv1"] = _make_conv_bn(next(keys), 1, 1, channels, mid,
                                         cin_pad=_cpad(channels))
            blk["conv2"] = _make_conv_bn(next(keys), 3, 3, mid, channels,
                                         cin_pad=_cpad(mid))
            layer.append(blk)
        layers.append(layer)
    params["layers"] = layers
    return params


# ------------------------------ forward pass -------------------------------

def _bottleneck(x, blk):
    if blk["downsample"] is not None:
        x = fused_conv_bn_lrelu(x, blk["downsample"], 3, 2)
    out = fused_conv_bn_lrelu(x, blk["conv1"], 1, 1)
    out = fused_conv_bn_lrelu(out, blk["conv2"], 3, 1, residual=x)
    return out


def darknet_forward(params, x_nchw):
    # NCHW (PyTorch convention) -> NHWC; bf16 activations between layers.
    x = jnp.transpose(x_nchw, (0, 2, 3, 1)).astype(jnp.bfloat16)
    x = fused_conv_bn_lrelu(x, params["conv1"], 3, 1)
    for blk in params["layers"][0]:
        x = _bottleneck(x, blk)
    for blk in params["layers"][1]:
        x = _bottleneck(x, blk)
    out1 = x
    for blk in params["layers"][2]:
        out1 = _bottleneck(out1, blk)
    out2 = out1
    for blk in params["layers"][3]:
        out2 = _bottleneck(out2, blk)
    out3 = out2
    for blk in params["layers"][4]:
        out3 = _bottleneck(out3, blk)

    def to_nchw(t, c):
        return jnp.transpose(t[..., :c], (0, 3, 1, 2)).astype(jnp.float32)

    return to_nchw(out1, 256), to_nchw(out2, 512), to_nchw(out3, 1024)


# -------------------------- pure-JAX reference -----------------------------
# Mirrors the kernel's quantization points exactly (bf16 activations, bf16
# scale-folded weights, f32 accumulation/epilogue, bf16 layer outputs) so the
# end-to-end comparison only sees accumulation-order differences.

def _ref_fused(x, p, ksize, stride, residual=None):
    w = (p["w4"] * p["scale"]).astype(jnp.bfloat16)
    pad = 1 if ksize == 3 else 0
    y = lax.conv_general_dilated(
        x, w, (stride, stride), [(pad, pad), (pad, pad)],
        dimension_numbers=("NHWC", "HWIO", "NHWC"),
        preferred_element_type=jnp.float32)
    y = y + p["shift"]
    y = jnp.where(y > 0, y, 0.1 * y)
    if residual is not None:
        y = y + residual.astype(jnp.float32)
    return y.astype(jnp.bfloat16)


def _ref_bottleneck(x, blk):
    if blk["downsample"] is not None:
        x = _ref_fused(x, blk["downsample"], 3, 2)
    out = _ref_fused(x, blk["conv1"], 1, 1)
    out = _ref_fused(out, blk["conv2"], 3, 1, residual=x)
    return out


def ref_forward(params, x_nchw):
    x = jnp.transpose(x_nchw, (0, 2, 3, 1)).astype(jnp.bfloat16)
    x = _ref_fused(x, params["conv1"], 3, 1)
    for blk in params["layers"][0]:
        x = _ref_bottleneck(x, blk)
    for blk in params["layers"][1]:
        x = _ref_bottleneck(x, blk)
    out1 = x
    for blk in params["layers"][2]:
        out1 = _ref_bottleneck(out1, blk)
    out2 = out1
    for blk in params["layers"][3]:
        out2 = _ref_bottleneck(out2, blk)
    out3 = out2
    for blk in params["layers"][4]:
        out3 = _ref_bottleneck(out3, blk)
    to_nchw = lambda t: jnp.transpose(t, (0, 3, 1, 2)).astype(jnp.float32)
    return to_nchw(out1), to_nchw(out2), to_nchw(out3)


# ------------------------------ unit check ----------------------------------

def _unit_check():
    """Tight (1e-4 rel) check of the fused matmul+BN+lrelu+residual kernel:
    bf16 inputs, f32 accumulation/output, multi-tile M and K grid."""
    key = jax.random.PRNGKey(1)
    k1, k2, k3, k4 = jax.random.split(key, 4)
    m, k, c = 512, 1152, 256          # tm=256 (2 M tiles), tk=384 (3 K steps)
    x = jax.random.normal(k1, (m, k), jnp.float32).astype(jnp.bfloat16)
    w = (jax.random.normal(k2, (k, c), jnp.float32) /
         jnp.sqrt(float(k))).astype(jnp.bfloat16)
    shift = jax.random.normal(k3, (1, c), jnp.float32)
    res = jax.random.normal(k4, (m, c), jnp.float32)
    out = _call_fused(x, w, shift, res, jnp.float32)
    ref = jnp.dot(x, w, preferred_element_type=jnp.float32) + shift
    ref = jnp.where(ref > 0, ref, 0.1 * ref) + res
    err = float(jnp.max(jnp.abs(out - ref)))
    lim = 1e-4 * (1.0 + float(jnp.max(jnp.abs(ref))))
    assert err <= lim, ("fused kernel unit check failed", err, lim)


# ---------------------------------- main ------------------------------------

if __name__ == "__main__":
    _unit_check()

    root = jax.random.PRNGKey(0)
    pkey, xkey = jax.random.split(root)
    params = init_darknet(pkey)

    x = jax.random.normal(xkey, (2, 3, 16, 16), jnp.float32)  # NCHW (PyTorch)

    fwd = jax.jit(darknet_forward)
    out1, out2, out3 = fwd(params, x)
    jax.block_until_ready((out1, out2, out3))

    assert out1.shape == (2, 256, 2, 2)
    assert out2.shape == (2, 512, 1, 1)
    assert out3.shape == (2, 1024, 1, 1)

    # End-to-end bf16 check vs a reference with identical quantization points;
    # the tolerance covers bf16 re-rounding divergence through ~50 layers
    # (tight f32-accumulation validation is in _unit_check above).
    r1, r2, r3 = jax.jit(ref_forward)(params, x)
    for o, r in ((out1, r1), (out2, r2), (out3, r3)):
        err = float(jnp.max(jnp.abs(o - r)))
        lim = 1e-2 + 3e-2 * float(jnp.max(jnp.abs(r)))
        assert err <= lim, (err, lim)

    print("KERNEL_OK")
</pallas_src>

<mosaic_0001>
module attributes {stable_mosaic.version = 11 : i64} {
  func.func @_fused_kernel_res(%arg0: i32, %arg1: i32, %arg2: memref<256x384xbf16, #tpu.memory_space<vmem>>, %arg3: memref<384x256xbf16, #tpu.memory_space<vmem>>, %arg4: memref<1x256xf32, #tpu.memory_space<vmem>>, %arg5: memref<256x256xf32, #tpu.memory_space<vmem>>, %arg6: memref<256x256xf32, #tpu.memory_space<vmem>>, %arg7: memref<256x256xf32, #tpu.memory_space<vmem>>) attributes {dimension_semantics = [#tpu.dimension_semantics<parallel>, #tpu.dimension_semantics<arbitrary>], iteration_bounds = array<i64: 2, 3>, scalar_prefetch = 0 : i64, scratch_operands = 1 : i64, tpu.core_type = #tpu.core_type<tc>, window_params = [{transform_indices = @transform_0, window_bounds = array<i64: 256, 384>}, {transform_indices = @transform_1, window_bounds = array<i64: 384, 256>}, {pipeline_mode = #tpu.pipeline_mode<synchronous>, transform_indices = @transform_2, window_bounds = array<i64: 1, 256>}, {transform_indices = @transform_3, window_bounds = array<i64: 256, 256>}, {transform_indices = @transform_4, window_bounds = array<i64: 256, 256>}]} {
    %c0_i32 = arith.constant 0 : i32
    %0 = arith.cmpi eq, %arg1, %c0_i32 : i32
    %1 = arith.extui %0 : i1 to i32
    %c0_i32_0 = arith.constant 0 : i32
    %2 = arith.cmpi ne, %1, %c0_i32_0 : i32
    scf.if %2 {
      %cst_9 = arith.constant 0.000000e+00 : f32
      %12 = vector.broadcast %cst_9 : f32 to vector<256x256xf32>
      %c0_10 = arith.constant 0 : index
      %c0_11 = arith.constant 0 : index
      %13 = vector.load %arg7[%c0_10, %c0_11] : memref<256x256xf32, #tpu.memory_space<vmem>>, vector<256x256xf32>
      tpu.vector_store %arg7[%c0_10, %c0_11], %12 {strides = array<i32>} : memref<256x256xf32, #tpu.memory_space<vmem>>, vector<256x256xf32>,
    } else {
    }
    %c0 = arith.constant 0 : index
    %c0_1 = arith.constant 0 : index
    %3 = vector.load %arg7[%c0, %c0_1] : memref<256x256xf32, #tpu.memory_space<vmem>>, vector<256x256xf32>
    %c0_2 = arith.constant 0 : index
    %c0_3 = arith.constant 0 : index
    %4 = vector.load %arg2[%c0_2, %c0_3] : memref<256x384xbf16, #tpu.memory_space<vmem>>, vector<256x384xbf16>
    %c0_4 = arith.constant 0 : index
    %c0_5 = arith.constant 0 : index
    %5 = vector.load %arg3[%c0_4, %c0_5] : memref<384x256xbf16, #tpu.memory_space<vmem>>, vector<384x256xbf16>
    %cst = arith.constant dense<0.000000e+00> : vector<256x256xf32>
    %6 = tpu.matmul %4, %5, %cst {dimension_numbers = #tpu.dot_dimension_numbers<[1], [0], [0], [1], [0, 0, 1, 1], [], []>} : vector<256x384xbf16>, vector<384x256xbf16>, vector<256x256xf32> -> vector<256x256xf32>
    %7 = arith.addf %3, %6 : vector<256x256xf32>
    %c0_6 = arith.constant 0 : index
    %c0_7 = arith.constant 0 : index
    %8 = vector.load %arg7[%c0_6, %c0_7] : memref<256x256xf32, #tpu.memory_space<vmem>>, vector<256x256xf32>
    tpu.vector_store %arg7[%c0_6, %c0_7], %7 {strides = array<i32>} : memref<256x256xf32, #tpu.memory_space<vmem>>, vector<256x256xf32>,
    %c2_i32 = arith.constant 2 : i32
    %9 = arith.cmpi eq, %arg1, %c2_i32 : i32
    %10 = arith.extui %9 : i1 to i32
    %c0_i32_8 = arith.constant 0 : i32
    %11 = arith.cmpi ne, %10, %c0_i32_8 : i32
    scf.if %11 {
      %c0_9 = arith.constant 0 : index
      %c0_10 = arith.constant 0 : index
      %12 = vector.load %arg7[%c0_9, %c0_10] : memref<256x256xf32, #tpu.memory_space<vmem>>, vector<256x256xf32>
      %c0_11 = arith.constant 0 : index
      %c0_12 = arith.constant 0 : index
      %13 = vector.load %arg4[%c0_11, %c0_12] : memref<1x256xf32, #tpu.memory_space<vmem>>, vector<1x256xf32>
      %14 = vector.broadcast %13 : vector<1x256xf32> to vector<256x256xf32>
      %15 = arith.addf %12, %14 : vector<256x256xf32>
      %cst_13 = arith.constant 0.000000e+00 : f32
      %16 = vector.broadcast %cst_13 : f32 to vector<256x256xf32>
      %17 = arith.cmpf ogt, %15, %16 : vector<256x256xf32>
      %cst_14 = arith.constant 1.000000e-01 : f32
      %18 = vector.broadcast %cst_14 : f32 to vector<256x256xf32>
      %19 = arith.mulf %18, %15 : vector<256x256xf32>
      %20 = arith.select %17, %15, %19 : vector<256x256xi1>, vector<256x256xf32>
      %c0_15 = arith.constant 0 : index
      %c0_16 = arith.constant 0 : index
      %21 = vector.load %arg5[%c0_15, %c0_16] : memref<256x256xf32, #tpu.memory_space<vmem>>, vector<256x256xf32>
      %22 = arith.addf %20, %21 : vector<256x256xf32>
      %c0_17 = arith.constant 0 : index
      %c0_18 = arith.constant 0 : index
      %23 = vector.load %arg6[%c0_17, %c0_18] : memref<256x256xf32, #tpu.memory_space<vmem>>, vector<256x256xf32>
      tpu.vector_store %arg6[%c0_17, %c0_18], %22 {strides = array<i32>} : memref<256x256xf32, #tpu.memory_space<vmem>>, vector<256x256xf32>,
    } else {
    }
    return
  }
  func.func @transform_0(%arg0: i32, %arg1: i32) -> (i32, i32) {
    %c0_i32 = arith.constant 0 : i32
    return %arg0, %arg1 : i32, i32
  }
  func.func @transform_1(%arg0: i32, %arg1: i32) -> (i32, i32) {
    %c0_i32 = arith.constant 0 : i32
    %c0_i32_0 = arith.constant 0 : i32
    return %arg1, %c0_i32 : i32, i32
  }
  func.func @transform_2(%arg0: i32, %arg1: i32) -> (i32, i32) {
    %c0_i32 = arith.constant 0 : i32
    %c0_i32_0 = arith.constant 0 : i32
    %c0_i32_1 = arith.constant 0 : i32
    return %c0_i32, %c0_i32_0 : i32, i32
  }
  func.func @transform_3(%arg0: i32, %arg1: i32) -> (i32, i32) {
    %c0_i32 = arith.constant 0 : i32
    %c0_i32_0 = arith.constant 0 : i32
    return %arg0, %c0_i32 : i32, i32
  }
  func.func @transform_4(%arg0: i32, %arg1: i32) -> (i32, i32) {
    %c0_i32 = arith.constant 0 : i32
    %c0_i32_0 = arith.constant 0 : i32
    return %arg0, %c0_i32 : i32, i32
  }
}

</mosaic_0001>

<bundles_post_ra>
// kernel: tpu_custom_call.1
= control target key start
LH: loop header
LB: loop body
LE: loop exit
PB: predicated region body
PF: predicated region fallthrough
CT: control target
= control target key end

     0   :  { %s4417_s0 = inlined_call_operand.hbm [shape: bf16[512,1152], index: 0, kind: input, shape index: {}]   ;;  %s4418_s1 = inlined_call_operand.hbm [shape: bf16[1152,256], index: 1, kind: input, shape index: {}]   ;;  %s4419_s2 = inlined_call_operand.hbm [shape: f32[1,256], index: 2, kind: input, shape index: {}]   ;;  %s4420_s3 = inlined_call_operand.hbm [shape: f32[512,256], index: 3, kind: input, shape index: {}]   ;;  %s4421_s4 = inlined_call_operand.hbm [shape: f32[512,256], index: 4, kind: output, shape index: {}]  }
   0x1   :  { %4433 = sst [smem:[#allocation31_spill]] %s4417_s0 }
   0x2   :  { %4434 = sst [smem:[#allocation32_spill]] %s4418_s1 }
   0x3   :  { %4435 = sst [smem:[#allocation33_spill]] %s4419_s2 }
   0x4   :  { %4436 = sst [smem:[#allocation34_spill]] %s4421_s4 }
   0x5   :  { %9 = vsyncpa [#allocation4], 0 }
   0x6   :  { %11 = vsyncpa [#allocation4 + $0x1], 0 }
   0x7   :  { %12 = vsyncpa [#allocation7], 0 }
   0x8   :  { %14 = vsyncpa [#allocation7 + $0x1], 0 }
   0x9   :  { %15 = vsyncpa [#allocation10], 0 }
   0xa   :  { %17 = vsyncpa [#allocation10 + $0x1], 0 }
   0xb   :  { %18 = vsyncpa [#allocation5], 0 }
   0xc   :  { %20 = vsyncpa [#allocation5 + $0x1], 0  ;;  %s3430_s15 = smov 0   ;;  %s3432_s16 = smov 0  }
   0xd   :  { %s3434_s17 = smov 0   ;;  %s3436_s18 = smov 0  }
   0xe   :  { %s3438_s19 = smov 0   ;;  %s3440_s20 = smov 0  }
   0xf   :  { %s3442_s21 = smov 0   ;;  %s3444_s22 = smov 0  }
  0x10   :  { %s3446_s23 = smov 0   ;;  %s3448_s24 = smov 0  }
  0x11   :  { %s3450_s25 = smov 0   ;;  %s3452_s26 = smov 0  }
  0x12   :  { %s3454_s27 = smov 0   ;;  %s3456_s28 = smov 0  }
  0x13 LB: > { %4437 = sst [smem:[#allocation17_spill]] %s3368_s22  ;;  %s3497_s29 = sadd.s32 4294967295, %s3392_s28   ;;  %s3392_s28 = sphi %s3456_s28, %s26_s28   ;;  %s3388_s27 = sphi %s3454_s27, %s4480_s27   ;;  %s3384_s26 = sphi %s3452_s26, %s4479_s26   ;;  %s3380_s25 = sphi %s3450_s25, %s4478_s25   ;;  %s3376_s24 = sphi %s3448_s24, %s4477_s24   ;;  %s3372_s23 = sphi %s3446_s23, %s4489_s23   ;;  %s3368_s22 = sphi %s3444_s22, %s4488_s22   ;;  %s3364_s21 = sphi %s3442_s21, %s4487_s21   ;;  %s3360_s20 = sphi %s3440_s20, %s4486_s20   ;;  %s3356_s19 = sphi %s3438_s19, %s4485_s19   ;;  %s3352_s18 = sphi %s3436_s18, %s4484_s18   ;;  %s3348_s17 = sphi %s3434_s17, %s4483_s17   ;;  %s3344_s16 = sphi %s3432_s16, %s4482_s16   ;;  %s3340_s15 = sphi %s3430_s15, %s4481_s15  }
  0x14   : > { %4438 = sst [smem:[#allocation18_spill]] %s3376_s24  ;;  %p60_p0 = scmp.ne.s32.totalorder %s3368_s22, %s3364_s21 }
  0x15   : > { %4439 = sst [smem:[#allocation19_spill]] %s3380_s25  ;;  %p61_p1 = scmp.eq.s32.totalorder %s3497_s29, 0 }
  0x16   : > { %4440 = sst [smem:[#allocation20_spill]] %s3384_s26  ;;  %p86_p2 = scmp.ne.s32.totalorder %s3356_s19, %s3352_s18 }
  0x17   : > { %4441 = sst [smem:[#allocation21_spill]] %s3388_s27  ;;  %p157_p3 = scmp.eq.s32.totalorder %s3497_s29, 5 }
  0x18   : > { %p2425_p4 = scmp.ge.s32.totalorder %s3392_s28, 1  ;;  %p3506_p5 = por %p61_p1, %p60_p0 }
  0x19   : > { %p3512_p6 = por %p86_p2, %p61_p1  ;;  %p170_p7 = scmp.lt.s32.totalorder %s3392_s28, 7 }
  0x1a   : > { %s4442_s30 = scalar_select %p3506_p5, 1, 0 }
  0x1b   : > { %s4444_s5 = scalar_select %p3512_p6, 1, 0 }
  0x1c   : > { %4443 = sst [smem:[#allocation22_spill]] %s4442_s30  ;;  %p3520_p8 = pnand %p2425_p4, %p170_p7 }
  0x1d   : > { %4445 = sst [smem:[#allocation23_spill]] %s4444_s5  ;;  %s3394_s10 = smov [#allocation8]  }
  0x1e   : > { %s4446_s2 = sld [smem:[#allocation33_spill]]  ;;  %s184_s11 = sshll.u32 %s3394_s10, 4  ;;  %s185_s11 = int_to_ptr.vmem [resolvable:$true] %s184_s11 }
  0x1f   : > { %s4447_s9 = scalar_select %p3520_p8, 1, 0 }
  0x20   : > { %p2969_p9 = pneg %p3520_p8  ;;  %s35_s12 = sadd.s32 1, %s3384_s26 }
  0x21   : > { %4448 = sst [smem:[#allocation24_spill]] %s4447_s9  ;;  %s38_s13 = sadd.s32 1, %s3388_s27 }
  0x22   : > { %p2970_p10 = pnand %p2969_p9, %p61_p1  ;;  %p36_p11 = scmp.ge.s32.totalorder %s35_s12, 3 }
  0x23   : > { %s47_s14 = sadd.s32 1, %s3372_s23  ;;  %p54_p12 = scmp.ne.s32.totalorder %s3372_s23, %s3368_s22 }
  0x24   : > { %s182_s8 = sshll.u32 %s4446_s2, 4  ;;  %p55_p13 = scmp.eq.s32.totalorder %s3392_s28, 0  ;;  %s183_s8 = int_to_ptr.hbm [resolvable:$true] %s182_s8 }
  0x25   : > { %2972 = dma.hbm_to_vmem [thread:$0]  (!%p2970_p10), %s183_s8, 32, %s185_s11, [#allocation7]  }
  0x26   : > { %s4491_s12 = smov (%p36_p11, %s35_s12), 0  ;;  %s4493_s13 = smov (!%p36_p11, %s38_s13), %s3388_s27 }
  0x27   : > { %4449 = sst [smem:[#allocation25_spill]] %s4491_s12  ;;  %s3539_s18 = ssub.s32 %s3384_s26, %s4491_s12 }
  0x28   : > { %p3543_p0 = por %p55_p13, %p54_p12  ;;  %p40_p2 = scmp.ge.s32.totalorder %s4493_s13, 2 }
  0x29   : > { %p71_p4 = scmp.eq.s32.totalorder %s3539_s18, 0  ;;  %p2988_p7 = scmp.lt.s32.totalorder %s3392_s28, 6 }
  0x2a   : > { %s195_s6 = sand.u32 1, %s3372_s23   ;;  %s4495_s13 = smov (%p40_p2, %s4493_s13), 0 }
  0x2b   : > { %4451 = sst [smem:[#allocation26_spill]] %s4495_s13  ;;  %s2952_s7 = smul.u32 384, %s195_s6 }
  0x2c   : > { %s3554_s8 = ssub.s32 %s3388_s27, %s4495_s13  ;;  %s201_s10 = smul.u32 3, %s3384_s26 }
  0x2d   : > { %s44_s11 = sor.u32 %s3539_s18, %s3554_s8  ;;  %s2953_s2 = smul.u32 288, %s3388_s27 }
  0x2e   : > { %p45_p9 = scmp.eq.s32.totalorder %s44_s11, 0  ;;  %s199_s12 = scalar_lea.vmem [#allocation3], %s2952_s7 }
  0x2f   : > { %s210_s4 = sshll.u32 %s199_s12, 4  ;;  %p2974_p10 = pnand %p2988_p7, %p3543_p0  ;;  %s211_s4 = int_to_ptr.vmem [resolvable:$true] %s210_s4 }
  0x30   : > { %s3565_s25 = scalar_select %p45_p9, %s3372_s23, %s47_s14  }
  0x31   : > { %s205_s13 = sadd.s32 %s2953_s2, %s201_s10  ;;  %s4453_s0 = sld [smem:[#allocation31_spill]] }
  0x32   : > { %4452 = sst [smem:[#allocation27_spill]] %s3565_s25  ;;  %s2430_s24 = sshll.u32 %s205_s13, 2 }
  0x33   : > { %s196_s21 = scalar_lea.sflag [#allocation4], %s195_s6  ;;  %s3395_s30 = smov 576  }
  0x34   : > { %s3396_s22 = smov 192   ;;  %s3397_s9 = smov 12  }
  0x35   : > { %s220_s14 = sand.u32 1, %s3392_s28   ;;  %s73_s25 = sadd.s32 1, %s3360_s20 }
  0x36   : > { %p80_p11 = scmp.ne.s32.totalorder %s3360_s20, %s3356_s19  ;;  %s222_s5 = sand.u32 1, %s3360_s20  }
  0x37   : > { %s207_s7 = scalar_lea.hbm %s4453_s0, %s2430_s24  ;;  %s2954_s24 = smul.u32 384, %s222_s5 }
  0x38   : > { %s208_s12 = sshll.u32 %s207_s7, 4  ;;  %p82_p12 = por %p80_p11, %p55_p13  ;;  %s209_s12 = int_to_ptr.hbm [resolvable:$true] %s208_s12 }
  0x39   : > { %2976 = dma.hbm_to_vmem [thread:$0]  (!%p2974_p10), %s209_s12, 6144, %s211_s4, %s196_s21, %s3395_s30, %s3396_s22, %s3397_s9  }
  0x3a   : > { %s3577_s2 = scalar_select %p71_p4, %s3360_s20, %s73_s25  }
  0x3b   : > { %s2935_s13 = smul.u32 384, %s3384_s26  ;;  %p2977_p0 = pnand %p2988_p7, %p82_p12 }
  0x3c   : > { %s4454_s1 = sld [smem:[#allocation32_spill]]  ;;  %s224_s25 = scalar_lea.vmem [#allocation6], %s2954_s24 }
  0x3d   : > { %s233_s9 = sshll.u32 %s224_s25, 4  ;;  %s221_s6 = scalar_lea.sflag [#allocation7], %s220_s14  ;;  %s234_s9 = int_to_ptr.vmem [resolvable:$true] %s233_s9 }
  0x3e   : > { %s3398_s10 = smov 128   ;;  %s3399_s11 = smov 8  }
  0x3f   : > { %s2424_s7 = sadd.s32 4294967294, %s3392_s28   ;;  %p118_p2 = scmp.eq.s32.totalorder %s3554_s8, 0 }
  0x40   : > { %s120_s12 = sadd.s32 1, %s3348_s17  ;;  %p127_p4 = scmp.ne.s32.totalorder %s3348_s17, %s3344_s16 }
  0x41   : > { %s3594_s21 = scalar_select %p118_p2, %s3348_s17, %s120_s12  }
  0x42   : > { %s230_s30 = scalar_lea.hbm %s4454_s1, %s2935_s13  ;;  %p3598_p9 = por %p127_p4, %p55_p13 }
  0x43   : > { %s231_s18 = sshll.u32 %s230_s30, 4  ;;  %p133_p10 = scmp.ne.s32.totalorder %s3344_s16, %s3340_s15  ;;  %s232_s18 = int_to_ptr.hbm [resolvable:$true] %s231_s18 }
  0x44   : > { %2979 = dma.hbm_to_vmem [thread:$0]  (!%p2977_p0), %s232_s18, 6144, %s234_s9, %s221_s6, %s3398_s10, %s3398_s10, %s3399_s11  }
  0x45   : > { %p3606_p11 = por %p157_p3, %p127_p4  ;;  %p163_p12 = scmp.eq.s32.totalorder %s2424_s7, 5 }
  0x46   : > { %p3612_p0 = por %p133_p10, %p61_p1  ;;  %s243_s24 = sand.u32 1, %s3348_s17  }
  0x47   : > { %p3617_p2 = por %p163_p12, %p133_p10  ;;  %s2433_s4 = sshll.u32 %s243_s24, 9 }
  0x48   : > { %s2836_s22 = sshll.u32 %s3388_s27, 9  ;;  %s247_s6 = scalar_lea.vmem [#allocation9], %s2433_s4 }
  0x49   : > { %s253_s9 = scalar_lea.hbm %s4420_s3, %s2836_s22  ;;  %s256_s10 = sshll.u32 %s247_s6, 4  ;;  %s257_s10 = int_to_ptr.vmem [resolvable:$true] %s256_s10 }
  0x4a   : > { %s254_s18 = sshll.u32 %s253_s9, 4  ;;  %p2980_p3 = pnand %p2988_p7, %p3598_p9  ;;  %s255_s18 = int_to_ptr.hbm [resolvable:$true] %s254_s18 }
  0x4b   : > { %s244_s11 = scalar_lea.sflag [#allocation10], %s243_s24  ;;  %s3400_s7 = smov 256  }
  0x4c   : > { %s3401_s12 = smov 16   ;;  %268 = sbr.rel (%p3520_p8) target bundleno = 843 (0x34b), region = 36 }
  0x4d   : > { %2982 = dma.hbm_to_vmem [thread:$0]  (!%p2980_p3), %s255_s18, 8192, %s257_s10, %s244_s11, %s3400_s7, %s3400_s7, %s3401_s12  }
  0x51   : > { %s4460_s1 = sld [smem:[#allocation17_spill]] }
  0x57   : > { %s270_s26 = sand.u32 1, %s4460_s1  }
  0x58   : > { %s2955_s30 = smul.u32 384, %s270_s26  ;;  %s271_s22 = scalar_lea.sflag [#allocation4], %s270_s26 }
  0x5a   : > { %s3632_s25 = scalar_lea.vmem [#allocation3], %s2955_s30 }
  0x5b   : > { %3319 = dma.done.wait (%p3506_p5), %s271_s22, 6144  }
  0x5c   : > { %3321 = vsyncadd (%p3506_p5), %s271_s22, 4294961152  ;;  %s280_s24 = sand.u32 1, %s3497_s29   ;;  %s282_s4 = sand.u32 1, %s3356_s19  }
  0x5d   : > { %s2956_s9 = smul.u32 384, %s282_s4  ;;  %s281_s0 = scalar_lea.sflag [#allocation7], %s280_s24 }
  0x5f   : > { %s3640_s18 = scalar_lea.vmem [#allocation6], %s2956_s9 }
  0x60   : > { %3323 = dma.done.wait (%p3512_p6), %s281_s0, 6144  }
  0x61   : > { %3325 = vsyncadd (%p3512_p6), %s281_s0, 4294961152 }
  0x62   : > { %3327 = dma.done.wait (%p61_p1), [#allocation7], 32  }
  0x63   : > { %3329 = vsyncadd (%p61_p1), [#allocation7], 4294967264  ;;  %s3651_s1 = sand.u32 1, %s3344_s16  }
  0x64   : > { %s2439_s26 = sshll.u32 %s3651_s1, 9  ;;  %s296_s27 = scalar_lea.sflag [#allocation10], %s3651_s1 }
  0x65   : > { %s3655_s6 = scalar_lea.vmem [#allocation9], %s2439_s26 }
  0x66   : > { %3331 = dma.done.wait (%p3612_p0), %s296_s27, 8192  }
  0x67   : > { %3333 = vsyncadd (%p3612_p0), %s296_s27, 4294959104  ;;  %s3661_s10 = scalar_lea.vmem [#allocation11], %s2439_s26  ;;  %s4463_s11 = sld [smem:[#allocation18_spill]] }
  0x6d   : > { %p2441_p5 = scmp.ne.s32.totalorder %s4463_s11, 0 }
  0x6f   : > { %343 = sbr.rel (%p2441_p5) target bundleno = 181 (0xb5), region = 56 }
  0x74   : > { %v3402_v0 = vmov 0.0  }
  0x75   : > { %344 = vst [vmem:[#allocation2 + $0xb0] sm:$0xff] %v3402_v0 }
  0x76   : > { %345 = vst [vmem:[#allocation2 + $0x1b0] sm:$0xff] %v3402_v0 }
  0x77   : > { %346 = vst [vmem:[#allocation2 + $0xd8] sm:$0xff] %v3402_v0 }
  0x78   : > { %347 = vst [vmem:[#allocation2 + $0x18] sm:$0xff] %v3402_v0 }
  0x79   : > { %348 = vst [vmem:[#allocation2 + $0x50] sm:$0xff] %v3402_v0 }
  0x7a   : > { %349 = vst [vmem:[#allocation2 + $0x168] sm:$0xff] %v3402_v0 }
  0x7b   : > { %350 = vst [vmem:[#allocation2 + $0x130] sm:$0xff] %v3402_v0 }
  0x7c   : > { %351 = vst [vmem:[#allocation2 + $0x48] sm:$0xff] %v3402_v0 }
  0x7d   : > { %352 = vst [vmem:[#allocation2 + $0x180] sm:$0xff] %v3402_v0 }
  0x7e   : > { %353 = vst [vmem:[#allocation2 + $0x110] sm:$0xff] %v3402_v0 }
  0x7f   : > { %354 = vst [vmem:[#allocation2 + $0x118] sm:$0xff] %v3402_v0 }
  0x80   : > { %355 = vst [vmem:[#allocation2 + $0x98] sm:$0xff] %v3402_v0 }
  0x81   : > { %356 = vst [vmem:[#allocation2 + $0x120] sm:$0xff] %v3402_v0 }
  0x82   : > { %357 = vst [vmem:[#allocation2 + $0x150] sm:$0xff] %v3402_v0 }
  0x83   : > { %358 = vst [vmem:[#allocation2 + $0x108] sm:$0xff] %v3402_v0 }
  0x84   : > { %359 = vst [vmem:[#allocation2 + $0x60] sm:$0xff] %v3402_v0 }
  0x85   : > { %360 = vst [vmem:[#allocation2 + $0xe0] sm:$0xff] %v3402_v0 }
  0x86   : > { %361 = vst [vmem:[#allocation2 + $0x188] sm:$0xff] %v3402_v0 }
  0x87   : > { %362 = vst [vmem:[#allocation2 + $0x138] sm:$0xff] %v3402_v0 }
  0x88   : > { %363 = vst [vmem:[#allocation2 + $0x140] sm:$0xff] %v3402_v0 }
  0x89   : > { %364 = vst [vmem:[#allocation2 + $0x80] sm:$0xff] %v3402_v0 }
  0x8a   : > { %365 = vst [vmem:[#allocation2 + $0x1a8] sm:$0xff] %v3402_v0 }
  0x8b   : > { %366 = vst [vmem:[#allocation2 + $0x1b8] sm:$0xff] %v3402_v0 }
  0x8c   : > { %367 = vst [vmem:[#allocation2 + $0x28] sm:$0xff] %v3402_v0 }
  0x8d   : > { %368 = vst [vmem:[#allocation2 + $0x1e8] sm:$0xff] %v3402_v0 }
  0x8e   : > { %369 = vst [vmem:[#allocation2 + $0xf8] sm:$0xff] %v3402_v0 }
  0x8f   : > { %370 = vst [vmem:[#allocation2 + $0x160] sm:$0xff] %v3402_v0 }
  0x90   : > { %371 = vst [vmem:[#allocation2 + $0x30] sm:$0xff] %v3402_v0 }
  0x91   : > { %372 = vst [vmem:[#allocation2 + $0x1e0] sm:$0xff] %v3402_v0 }
  0x92   : > { %373 = vst [vmem:[#allocation2] sm:$0xff] %v3402_v0 }
  0x93   : > { %374 = vst [vmem:[#allocation2 + $0xf0] sm:$0xff] %v3402_v0 }
  0x94   : > { %375 = vst [vmem:[#allocation2 + $0x8] sm:$0xff] %v3402_v0 }
  0x95   : > { %376 = vst [vmem:[#allocation2 + $0x148] sm:$0xff] %v3402_v0 }
  0x96   : > { %377 = vst [vmem:[#allocation2 + $0x1d0] sm:$0xff] %v3402_v0 }
  0x97   : > { %378 = vst [vmem:[#allocation2 + $0x100] sm:$0xff] %v3402_v0 }
  0x98   : > { %379 = vst [vmem:[#allocation2 + $0xc8] sm:$0xff] %v3402_v0 }
  0x99   : > { %380 = vst [vmem:[#allocation2 + $0x40] sm:$0xff] %v3402_v0 }
  0x9a   : > { %381 = vst [vmem:[#allocation2 + $0x1f8] sm:$0xff] %v3402_v0 }
  0x9b   : > { %382 = vst [vmem:[#allocation2 + $0x20] sm:$0xff] %v3402_v0 }
  0x9c   : > { %383 = vst [vmem:[#allocation2 + $0x128] sm:$0xff] %v3402_v0 }
  0x9d   : > { %384 = vst [vmem:[#allocation2 + $0x1a0] sm:$0xff] %v3402_v0 }
  0x9e   : > { %385 = vst [vmem:[#allocation2 + $0x1f0] sm:$0xff] %v3402_v0 }
  0x9f   : > { %386 = vst [vmem:[#allocation2 + $0xe8] sm:$0xff] %v3402_v0 }
  0xa0   : > { %387 = vst [vmem:[#allocation2 + $0x78] sm:$0xff] %v3402_v0 }
  0xa1   : > { %388 = vst [vmem:[#allocation2 + $0x70] sm:$0xff] %v3402_v0 }
  0xa2   : > { %389 = vst [vmem:[#allocation2 + $0x90] sm:$0xff] %v3402_v0 }
  0xa3   : > { %390 = vst [vmem:[#allocation2 + $0x1d8] sm:$0xff] %v3402_v0 }
  0xa4   : > { %391 = vst [vmem:[#allocation2 + $0xd0] sm:$0xff] %v3402_v0 }
  0xa5   : > { %392 = vst [vmem:[#allocation2 + $0xb8] sm:$0xff] %v3402_v0 }
  0xa6   : > { %393 = vst [vmem:[#allocation2 + $0x88] sm:$0xff] %v3402_v0 }
  0xa7   : > { %394 = vst [vmem:[#allocation2 + $0xa8] sm:$0xff] %v3402_v0 }
  0xa8   : > { %395 = vst [vmem:[#allocation2 + $0x1c8] sm:$0xff] %v3402_v0 }
  0xa9   : > { %396 = vst [vmem:[#allocation2 + $0x170] sm:$0xff] %v3402_v0 }
  0xaa   : > { %397 = vst [vmem:[#allocation2 + $0x178] sm:$0xff] %v3402_v0 }
  0xab   : > { %398 = vst [vmem:[#allocation2 + $0x68] sm:$0xff] %v3402_v0 }
  0xac   : > { %399 = vst [vmem:[#allocation2 + $0x190] sm:$0xff] %v3402_v0 }
  0xad   : > { %400 = vst [vmem:[#allocation2 + $0x198] sm:$0xff] %v3402_v0 }
  0xae   : > { %401 = vst [vmem:[#allocation2 + $0x38] sm:$0xff] %v3402_v0 }
  0xaf   : > { %402 = vst [vmem:[#allocation2 + $0xc0] sm:$0xff] %v3402_v0 }
  0xb0   : > { %403 = vst [vmem:[#allocation2 + $0x1c0] sm:$0xff] %v3402_v0 }
  0xb1   : > { %404 = vst [vmem:[#allocation2 + $0x158] sm:$0xff] %v3402_v0 }
  0xb2   : > { %405 = vst [vmem:[#allocation2 + $0x10] sm:$0xff] %v3402_v0 }
  0xb3   : > { %406 = vst [vmem:[#allocation2 + $0x58] sm:$0xff] %v3402_v0 }
  0xb4   : > { %407 = vst [vmem:[#allocation2 + $0xa0] sm:$0xff] %v3402_v0 }
  0xb5 PF: > { %v2692_v1 = vld [vmem:[%s3640_s18 + $0x70] sm:$0xf]  ;;  %v2900_v2 = vld [vmem:[%s3640_s18 + $0x74] sm:$0xf0]  ;;  %v2684_v6 = vld [vmem:[%s3640_s18 + $0x60] sm:$0xf] }
  0xb6   : > { %v2756_v3 = vld [vmem:[%s3640_s18 + $0xf0] sm:$0xf]  ;;  %v2693_v4 = vor.u32 %v2900_v2, %v2692_v1  ;;  %v2916_v5 = vld [vmem:[%s3640_s18 + $0xf4] sm:$0xf0]  ;;  %v2898_v7 = vld [vmem:[%s3640_s18 + $0x64] sm:$0xf0] }
  0xb7   : > { %v2757_v8 = vor.u32 %v2916_v5, %v2756_v3  ;;  %v2748_v9 = vld [vmem:[%s3640_s18 + $0xe0] sm:$0xf]  ;;  %v2914_v10 = vld [vmem:[%s3640_s18 + $0xe4] sm:$0xf0]  ;;  %v2685_v11 = vor.u32 %v2898_v7, %v2684_v6  ;;  %v2676_v13 = vld [vmem:[%s3640_s18 + $0x50] sm:$0xf] }
  0xb8   : > { %1080 = vmatpush.bf16.msra.mxu0 %v2693_v4  ;;  %2936 = vmatpush.bf16.msra.mxu2 %v2693_v4  ;;  %v2749_v12 = vor.u32 %v2914_v10, %v2748_v9  ;;  %v2896_v14 = vld [vmem:[%s3640_s18 + $0x54] sm:$0xf0]  ;;  %v2740_v15 = vld [vmem:[%s3640_s18 + $0xd0] sm:$0xf]  ;;  %v2668_v19 = vld [vmem:[%s3640_s18 + $0x40] sm:$0xf] }
  0xb9   : > { %1169 = vmatpush.bf16.msra.mxu1 %v2757_v8  ;;  %2944 = vmatpush.bf16.msra.mxu3 %v2757_v8  ;;  %v2912_v16 = vld [vmem:[%s3640_s18 + $0xd4] sm:$0xf0]  ;;  %v2677_v17 = vor.u32 %v2896_v14, %v2676_v13  ;;  %v2894_v20 = vld [vmem:[%s3640_s18 + $0x44] sm:$0xf0]  ;;  %v2732_v21 = vld [vmem:[%s3640_s18 + $0xc0] sm:$0xf] }
  0xba   : > { %v2741_v18 = vor.u32 %v2912_v16, %v2740_v15  ;;  %v2910_v22 = vld [vmem:[%s3640_s18 + $0xc4] sm:$0xf0]  ;;  %v2669_v23 = vor.u32 %v2894_v20, %v2668_v19  ;;  %v2660_v25 = vld [vmem:[%s3640_s18 + $0x30] sm:$0xf]  ;;  %v2892_v26 = vld [vmem:[%s3640_s18 + $0x34] sm:$0xf0] }
  0xbb   : > { %v2733_v24 = vor.u32 %v2910_v22, %v2732_v21  ;;  %v2724_v27 = vld [vmem:[%s3640_s18 + $0xb0] sm:$0xf]  ;;  %v2908_v28 = vld [vmem:[%s3640_s18 + $0xb4] sm:$0xf0]  ;;  %v2661_v29 = vor.u32 %v2892_v26, %v2660_v25  ;;  %v2652_v31 = vld [vmem:[%s3640_s18 + $0x20] sm:$0xf] }
  0xbc   : > { %1081 = vmatpush.bf16.msra.mxu0 %v2685_v11  ;;  %2937 = vmatpush.bf16.msra.mxu2 %v2685_v11  ;;  %v2725_v30 = vor.u32 %v2908_v28, %v2724_v27  ;;  %v2890_v32 = vld [vmem:[%s3640_s18 + $0x24] sm:$0xf0]  ;;  %v2716_v33 = vld [vmem:[%s3640_s18 + $0xa0] sm:$0xf]  ;;  %v2644_v37 = vld [vmem:[%s3640_s18 + $0x10] sm:$0xf] }
  0xbd   : > { %1170 = vmatpush.bf16.msra.mxu1 %v2749_v12  ;;  %2945 = vmatpush.bf16.msra.mxu3 %v2749_v12  ;;  %v2906_v34 = vld [vmem:[%s3640_s18 + $0xa4] sm:$0xf0]  ;;  %v2653_v35 = vor.u32 %v2890_v32, %v2652_v31  ;;  %v2888_v38 = vld [vmem:[%s3640_s18 + $0x14] sm:$0xf0]  ;;  %v2708_v39 = vld [vmem:[%s3640_s18 + $0x90] sm:$0xf] }
  0xbe   : > { %v2717_v36 = vor.u32 %v2906_v34, %v2716_v33  ;;  %v2904_v40 = vld [vmem:[%s3640_s18 + $0x94] sm:$0xf0]  ;;  %v2645_v41 = vor.u32 %v2888_v38, %v2644_v37  ;;  %v2636_v42 = vld [vmem:[%s3640_s18] sm:$0xf]  ;;  %v2886_v44 = vld [vmem:[%s3640_s18 + $0x4] sm:$0xf0] }
  0xbf   : > { %v2709_v43 = vor.u32 %v2904_v40, %v2708_v39  ;;  %v2700_v45 = vld [vmem:[%s3640_s18 + $0x80] sm:$0xf]  ;;  %v2902_v46 = vld [vmem:[%s3640_s18 + $0x84] sm:$0xf0]  ;;  %v2838_v48 = vld [vmem:[%s3632_s25 + $0x8] sm:$0xf0]  ;;  %v2637_v55 = vor.u32 %v2886_v44, %v2636_v42 }
  0xc0   : > { %1082 = vmatpush.bf16.msra.mxu0 %v2677_v17  ;;  %2938 = vmatpush.bf16.msra.mxu2 %v2677_v17  ;;  %v2444_v47 = vld [vmem:[%s3632_s25] sm:$0xf]  ;;  %v2862_v50 = vld [vmem:[%s3632_s25 + $0xc8] sm:$0xf0]  ;;  %v2899_v51 = vld [vmem:[%s3640_s18 + $0x74] sm:$0xf]  ;;  %v2701_v59 = vor.u32 %v2902_v46, %v2700_v45 }
  0xc1   : > { %1171 = vmatpush.bf16.msra.mxu1 %v2741_v18  ;;  %2946 = vmatpush.bf16.msra.mxu3 %v2741_v18  ;;  %v2540_v49 = vld [vmem:[%s3632_s25 + $0xc0] sm:$0xf]  ;;  %v2694_v52 = vld [vmem:[%s3640_s18 + $0x78] sm:$0xf0]  ;;  %v2820_v53 = vld [vmem:[%s3640_s18 + $0x170] sm:$0xf]  ;;  %v3777_v4 = vor.u32 %v2838_v48, %v2444_v47 }
  0xc2   : > { %v2932_v54 = vld [vmem:[%s3640_s18 + $0x174] sm:$0xf0]  ;;  %v2837_v56 = vld [vmem:[%s3632_s25 + $0x4] sm:$0xf]  ;;  %v2446_v57 = vld [vmem:[%s3632_s25 + $0xc] sm:$0xf0]  ;;  %v2697_v63 = vor.u32 %v2899_v51, %v2694_v52  ;;  %v3779_v5 = vor.u32 %v2862_v50, %v2540_v49 }
  0xc3   : > { %v2861_v58 = vld [vmem:[%s3632_s25 + $0xc4] sm:$0xf]  ;;  %v2542_v60 = vld [vmem:[%s3632_s25 + $0xcc] sm:$0xf0]  ;;  %v2915_v61 = vld [vmem:[%s3640_s18 + $0xf4] sm:$0xf]  ;;  %v2821_v0 = vor.u32 %v2932_v54, %v2820_v53  ;;  %v3784_v9 = vor.u32 %v2837_v56, %v2446_v57 }
  0xc4   : > { %1083 = vmatpush.bf16.msra.mxu0 %v2669_v23  ;;  %2939 = vmatpush.bf16.msra.mxu2 %v2669_v23  ;;  %v2758_v62 = vld [vmem:[%s3640_s18 + $0xf8] sm:$0xf0]  ;;  %v2931_v1 = vld [vmem:[%s3640_s18 + $0x174] sm:$0xf]  ;;  %v2897_v3 = vld [vmem:[%s3640_s18 + $0x64] sm:$0xf]  ;;  %v3786_v10 = vor.u32 %v2861_v58, %v2542_v60 }
  0xc5   : > { %1172 = vmatpush.bf16.msra.mxu1 %v2733_v24  ;;  %2947 = vmatpush.bf16.msra.mxu3 %v2733_v24  ;;  %v2822_v2 = vld [vmem:[%s3640_s18 + $0x178] sm:$0xf0]  ;;  %v2686_v6 = vld [vmem:[%s3640_s18 + $0x68] sm:$0xf0]  ;;  %v2812_v7 = vld [vmem:[%s3640_s18 + $0x160] sm:$0xf]  ;;  %v2761_v11 = vor.u32 %v2915_v61, %v2758_v62 }
  0xc6   : > { %v2930_v8 = vld [vmem:[%s3640_s18 + $0x164] sm:$0xf0]  ;;  %v2825_v12 = vor.u32 %v2931_v1, %v2822_v2  ;;  %v2913_v13 = vld [vmem:[%s3640_s18 + $0xe4] sm:$0xf]  ;;  %v2689_v14 = vor.u32 %v2897_v3, %v2686_v6  ;;  %v2750_v16 = vld [vmem:[%s3640_s18 + $0xe8] sm:$0xf0] }
  0xc7   : > { %v2813_v15 = vor.u32 %v2930_v8, %v2812_v7  ;;  %v2929_v17 = vld [vmem:[%s3640_s18 + $0x164] sm:$0xf]  ;;  %v2814_v18 = vld [vmem:[%s3640_s18 + $0x168] sm:$0xf0]  ;;  %v2895_v19 = vld [vmem:[%s3640_s18 + $0x54] sm:$0xf]  ;;  %v2753_v22 = vor.u32 %v2913_v13, %v2750_v16 }
  0xc8   : > { %1084 = vmatpush.bf16.msra.mxu0 %v2661_v29  ;;  %2940 = vmatpush.bf16.msra.mxu2 %v2661_v29  ;;  %v2678_v20 = vld [vmem:[%s3640_s18 + $0x58] sm:$0xf0]  ;;  %v2804_v21 = vld [vmem:[%s3640_s18 + $0x150] sm:$0xf]  ;;  %v2817_v23 = vor.u32 %v2929_v17, %v2814_v18  ;;  %v2928_v24 = vld [vmem:[%s3640_s18 + $0x154] sm:$0xf0] }
  0xc9   : > { %1173 = vmatpush.bf16.msra.mxu1 %v2725_v30  ;;  %2948 = vmatpush.bf16.msra.mxu3 %v2725_v30  ;;  %v2911_v25 = vld [vmem:[%s3640_s18 + $0xd4] sm:$0xf]  ;;  %v2681_v26 = vor.u32 %v2895_v19, %v2678_v20  ;;  %v2805_v27 = vor.u32 %v2928_v24, %v2804_v21  ;;  %v2742_v28 = vld [vmem:[%s3640_s18 + $0xd8] sm:$0xf0]  ;;  %v2456_v33 = vld [vmem:[%s3632_s25 + $0x18] sm:$0xf] }
  0xca   : > { %v2927_v29 = vld [vmem:[%s3640_s18 + $0x154] sm:$0xf]  ;;  %v2806_v30 = vld [vmem:[%s3640_s18 + $0x158] sm:$0xf0]  ;;  %v2745_v31 = vor.u32 %v2911_v25, %v2742_v28  ;;  %v2841_v34 = vld [vmem:[%s3632_s25 + $0x20] sm:$0xf0] }
  0xcb   : > { %v2809_v32 = vor.u32 %v2927_v29, %v2806_v30  ;;  %v2840_v37 = vld [vmem:[%s3632_s25 + $0x1c] sm:$0xf]  ;;  %v2458_v38 = vld [vmem:[%s3632_s25 + $0x24] sm:$0xf0]  ;;  %v2893_v45 = vld [vmem:[%s3640_s18 + $0x44] sm:$0xf] }
  0xcc   : > { %1085 = vmatpush.bf16.msra.mxu0 %v2653_v35  ;;  %2941 = vmatpush.bf16.msra.mxu2 %v2653_v35  ;;  %v2552_v35 = vld [vmem:[%s3632_s25 + $0xd8] sm:$0xf]  ;;  %v2864_v39 = vld [vmem:[%s3632_s25 + $0xdc] sm:$0xf]  ;;  %v2554_v40 = vld [vmem:[%s3632_s25 + $0xe4] sm:$0xf0] }
  0xcd   : > { %1174 = vmatpush.bf16.msra.mxu1 %v2717_v36  ;;  %2949 = vmatpush.bf16.msra.mxu3 %v2717_v36  ;;  %v2865_v36 = vld [vmem:[%s3632_s25 + $0xe0] sm:$0xf0]  ;;  %v3818_v44 = vor.u32 %v2864_v39, %v2554_v40  ;;  %v2670_v46 = vld [vmem:[%s3640_s18 + $0x48] sm:$0xf0]  ;;  %v2796_v47 = vld [vmem:[%s3640_s18 + $0x140] sm:$0xf] }
  0xce   : > { %v3814_v42 = vor.u32 %v2865_v36, %v2552_v35  ;;  %v2673_v48 = vor.u32 %v2893_v45, %v2670_v46  ;;  %v2926_v49 = vld [vmem:[%s3640_s18 + $0x144] sm:$0xf0]  ;;  %v2909_v50 = vld [vmem:[%s3640_s18 + $0xc4] sm:$0xf]  ;;  %v2734_v51 = vld [vmem:[%s3640_s18 + $0xc8] sm:$0xf0] }
  0xcf   : > { %v2797_v52 = vor.u32 %v2926_v49, %v2796_v47  ;;  %v2737_v53 = vor.u32 %v2909_v50, %v2734_v51  ;;  %v2925_v54 = vld [vmem:[%s3640_s18 + $0x144] sm:$0xf]  ;;  %v2468_v57 = vld [vmem:[%s3632_s25 + $0x30] sm:$0xf]  ;;  %v2844_v58 = vld [vmem:[%s3632_s25 + $0x38] sm:$0xf0] }
  0xd0   : > { %1086 = vmatpush.bf16.msra.mxu0 %v2645_v41  ;;  %2942 = vmatpush.bf16.msra.mxu2 %v2645_v41  ;;  %v3812_v41 = vor.u32 %v2841_v34, %v2456_v33  ;;  %v2868_v60 = vld [vmem:[%s3632_s25 + $0xf8] sm:$0xf0]  ;;  %v2843_v61 = vld [vmem:[%s3632_s25 + $0x34] sm:$0xf]  ;;  %v2470_v62 = vld [vmem:[%s3632_s25 + $0x3c] sm:$0xf0]  ;;  %v3840_v1 = vor.u32 %v2844_v58, %v2468_v57 }
  0xd1   : > { %1175 = vmatpush.bf16.msra.mxu1 %v2709_v43  ;;  %2950 = vmatpush.bf16.msra.mxu3 %v2709_v43  ;;  %v3816_v43 = vor.u32 %v2840_v37, %v2458_v38  ;;  %v3844_v3 = vor.u32 %v2843_v61, %v2470_v62  ;;  %v2891_v7 = vld [vmem:[%s3640_s18 + $0x34] sm:$0xf]  ;;  %v2662_v8 = vld [vmem:[%s3640_s18 + $0x38] sm:$0xf0]  ;;  %v2924_v13 = vld [vmem:[%s3640_s18 + $0x134] sm:$0xf0] }
  0xd2   : > { %v2923_v18 = vld [vmem:[%s3640_s18 + $0x134] sm:$0xf]  ;;  %v2790_v19 = vld [vmem:[%s3640_s18 + $0x138] sm:$0xf0]  ;;  %v2480_v21 = vld [vmem:[%s3632_s25 + $0x48] sm:$0xf] }
  0xd3   : > { %v2793_v20 = vor.u32 %v2923_v18, %v2790_v19  ;;  %v2871_v24 = vld [vmem:[%s3632_s25 + $0x110] sm:$0xf0]  ;;  %v2846_v25 = vld [vmem:[%s3632_s25 + $0x4c] sm:$0xf]  ;;  %v2578_v28 = vld [vmem:[%s3632_s25 + $0x114] sm:$0xf0] }
  0xd4   : > { %1087 = vmatpush.bf16.msra.mxu0 %v2637_v55  ;;  %2943 = vmatpush.bf16.msra.mxu2 %v2637_v55  ;;  %v2798_v55 = vld [vmem:[%s3640_s18 + $0x148] sm:$0xf0]  ;;  %v2889_v33 = vld [vmem:[%s3640_s18 + $0x24] sm:$0xf]  ;;  %v2780_v35 = vld [vmem:[%s3640_s18 + $0x120] sm:$0xf] }
  0xd5   : > { %1176 = vmatpush.bf16.msra.mxu1 %v2701_v59  ;;  %2951 = vmatpush.bf16.msra.mxu3 %v2701_v59  ;;  %v2801_v56 = vor.u32 %v2925_v54, %v2798_v55  ;;  %v2564_v59 = vld [vmem:[%s3632_s25 + $0xf0] sm:$0xf]  ;;  %v2654_v34 = vld [vmem:[%s3640_s18 + $0x28] sm:$0xf0]  ;;  %v2922_v37 = vld [vmem:[%s3640_s18 + $0x124] sm:$0xf0] }
  0xd6   : > { %v3842_v2 = vor.u32 %v2868_v60, %v2564_v59  ;;  %v2657_v36 = vor.u32 %v2889_v33, %v2654_v34  ;;  %v2905_v38 = vld [vmem:[%s3640_s18 + $0xa4] sm:$0xf]  ;;  %v2718_v39 = vld [vmem:[%s3640_s18 + $0xa8] sm:$0xf0]  ;;  %v2781_v40 = vor.u32 %v2922_v37, %v2780_v35  ;;  %v2492_v49 = vld [vmem:[%s3632_s25 + $0x60] sm:$0xf] }
  0xd7   : > { %1088 = vmatmul.bf16.vlgmr.msra.gmra.mxu0 %v3777_v4  ;;  %1128 = vmatmul.bf16.vlgmr.msra.gmra.mxu2 %v3779_v5  ;;  %v2721_v45 = vor.u32 %v2905_v38, %v2718_v39  ;;  %v2921_v46 = vld [vmem:[%s3640_s18 + $0x124] sm:$0xf]  ;;  %v2782_v47 = vld [vmem:[%s3640_s18 + $0x128] sm:$0xf0]  ;;  %v2588_v51 = vld [vmem:[%s3632_s25 + $0x120] sm:$0xf] }
  0xd8   : > { %1258 = vmatpush.bf16.msrb.mxu2 %v2821_v0  ;;  %1177 = vmatmul.bf16.vlgmr.msra.gmra.mxu1 %v3784_v9  ;;  %v2566_v0 = vld [vmem:[%s3632_s25 + $0xfc] sm:$0xf0]  ;;  %v2850_v50 = vld [vmem:[%s3632_s25 + $0x68] sm:$0xf0]  ;;  %v2494_v54 = vld [vmem:[%s3632_s25 + $0x6c] sm:$0xf0] }
  0xd9   : > { %1347 = vmatpush.bf16.msrb.mxu3 %v2697_v63  ;;  %1436 = vmatpush.bf16.msrb.mxu0 %v2761_v11  ;;  %v2867_v63 = vld [vmem:[%s3632_s25 + $0xf4] sm:$0xf]  ;;  %v2788_v11 = vld [vmem:[%s3640_s18 + $0x130] sm:$0xf]  ;;  %v2873_v55 = vld [vmem:[%s3632_s25 + $0x124] sm:$0xf]  ;;  %v3896_v57 = vor.u32 %v2850_v50, %v2492_v49 }
  0xda   : > { %1217 = vmatmul.bf16.vlgmr.msra.gmra.mxu3 %v3786_v10  ;;  %1525 = vmatpush.bf16.msrb.mxu1 %v2825_v12  ;;  %v3846_v6 = vor.u32 %v2867_v63, %v2566_v0  ;;  %v2665_v12 = vor.u32 %v2891_v7, %v2662_v8  ;;  %v2789_v16 = vor.u32 %v2924_v13, %v2788_v11  ;;  %v2887_v61 = vld [vmem:[%s3640_s18 + $0x14] sm:$0xf]  ;;  %v2646_v62 = vld [vmem:[%s3640_s18 + $0x18] sm:$0xf0]  ;;  %v2772_v63 = vld [vmem:[%s3640_s18 + $0x110] sm:$0xf] }
  0xdb   : > { %v2649_v0 = vor.u32 %v2887_v61, %v2646_v62  ;;  %v2920_v7 = vld [vmem:[%s3640_s18 + $0x114] sm:$0xf0]  ;;  %v2903_v8 = vld [vmem:[%s3640_s18 + $0x94] sm:$0xf]  ;;  %v2710_v11 = vld [vmem:[%s3640_s18 + $0x98] sm:$0xf0] }
  0xdc   : > { %1259 = vmatpush.bf16.msrb.mxu2 %v2813_v15  ;;  %v2726_v15 = vld [vmem:[%s3640_s18 + $0xb8] sm:$0xf0]  ;;  %v2713_v13 = vor.u32 %v2903_v8, %v2710_v11  ;;  %v2853_v18 = vld [vmem:[%s3632_s25 + $0x80] sm:$0xf0]  ;;  %v2600_v19 = vld [vmem:[%s3632_s25 + $0x138] sm:$0xf] }
  0xdd   : > { %1348 = vmatpush.bf16.msrb.mxu3 %v2689_v14  ;;  %1437 = vmatpush.bf16.msrb.mxu0 %v2753_v22  ;;  %v2907_v14 = vld [vmem:[%s3640_s18 + $0xb4] sm:$0xf]  ;;  %v2885_v33 = vld [vmem:[%s3640_s18 + $0x4] sm:$0xf]  ;;  %v2638_v34 = vld [vmem:[%s3640_s18 + $0x8] sm:$0xf0] }
  0xde   : > { %1526 = vmatpush.bf16.msrb.mxu1 %v2817_v23  ;;  %v2729_v17 = vor.u32 %v2907_v14, %v2726_v15  ;;  %v2847_v22 = vld [vmem:[%s3632_s25 + $0x50] sm:$0xf0]  ;;  %v2576_v23 = vld [vmem:[%s3632_s25 + $0x108] sm:$0xf]  ;;  %v2774_v15 = vld [vmem:[%s3640_s18 + $0x118] sm:$0xf0] }
  0xdf   : > { %v3868_v29 = vor.u32 %v2847_v22, %v2480_v21  ;;  %v3870_v30 = vor.u32 %v2871_v24, %v2576_v23  ;;  %v2919_v14 = vld [vmem:[%s3640_s18 + $0x114] sm:$0xf]  ;;  %v2852_v21 = vld [vmem:[%s3632_s25 + $0x7c] sm:$0xf]  ;;  %v2506_v22 = vld [vmem:[%s3632_s25 + $0x84] sm:$0xf0] }
  0xe0   : > { %1260 = vmatpush.bf16.msrb.mxu2 %v2805_v27  ;;  %v2870_v27 = vld [vmem:[%s3632_s25 + $0x10c] sm:$0xf]  ;;  %v2876_v23 = vld [vmem:[%s3632_s25 + $0x13c] sm:$0xf]  ;;  %v2602_v24 = vld [vmem:[%s3632_s25 + $0x144] sm:$0xf0] }
  0xe1   : > { %1349 = vmatpush.bf16.msrb.mxu3 %v2681_v26  ;;  %1438 = vmatpush.bf16.msrb.mxu0 %v2745_v31  ;;  %v2482_v26 = vld [vmem:[%s3632_s25 + $0x54] sm:$0xf0]  ;;  %v2764_v35 = vld [vmem:[%s3640_s18 + $0x100] sm:$0xf]  ;;  %v2918_v37 = vld [vmem:[%s3640_s18 + $0x104] sm:$0xf0] }
  0xe2   : > { %1527 = vmatpush.bf16.msrb.mxu1 %v2809_v32  ;;  %v3872_v31 = vor.u32 %v2846_v25, %v2482_v26  ;;  %v3874_v32 = vor.u32 %v2870_v27, %v2578_v28  ;;  %v3928_v27 = vor.u32 %v2852_v21, %v2506_v22  ;;  %v3930_v28 = vor.u32 %v2876_v23, %v2602_v24  ;;  %v2901_v38 = vld [vmem:[%s3640_s18 + $0x84] sm:$0xf]  ;;  %v2702_v39 = vld [vmem:[%s3640_s18 + $0x88] sm:$0xf0]  ;;  %v2516_v49 = vld [vmem:[%s3632_s25 + $0x90] sm:$0xf] }
  0xe3   : > { %v2856_v50 = vld [vmem:[%s3632_s25 + $0x98] sm:$0xf0]  ;;  %v2859_v8 = vld [vmem:[%s3632_s25 + $0xb0] sm:$0xf0]  ;;  %v2624_v11 = vld [vmem:[%s3632_s25 + $0x168] sm:$0xf] }
  0xe4   : > { %1261 = vmatpush.bf16.msrb.mxu2 %v2797_v52  ;;  %v2874_v52 = vld [vmem:[%s3632_s25 + $0x128] sm:$0xf0]  ;;  %v3952_v61 = vor.u32 %v2856_v50, %v2516_v49  ;;  %v2452_v21 = vld [vmem:[%s3632_s25 + $0x8] sm:$0xf]  ;;  %v2839_v22 = vld [vmem:[%s3632_s25 + $0x10] sm:$0xf0] }
  0xe5   : > { %1350 = vmatpush.bf16.msrb.mxu3 %v2673_v48  ;;  %1439 = vmatpush.bf16.msrb.mxu0 %v2737_v53  ;;  %v2785_v48 = vor.u32 %v2921_v46, %v2782_v47  ;;  %v2849_v53 = vld [vmem:[%s3632_s25 + $0x64] sm:$0xf]  ;;  %v3898_v58 = vor.u32 %v2874_v52, %v2588_v51  ;;  %v2766_v47 = vld [vmem:[%s3640_s18 + $0x108] sm:$0xf0]  ;;  %v2612_v51 = vld [vmem:[%s3632_s25 + $0x150] sm:$0xf]  ;;  %v2453_v23 = vor.u32 %v2839_v22, %v2452_v21 }
  0xe6   : > { %1528 = vmatpush.bf16.msrb.mxu1 %v2801_v56  ;;  %v2590_v56 = vld [vmem:[%s3632_s25 + $0x12c] sm:$0xf0]  ;;  %v3900_v59 = vor.u32 %v2849_v53, %v2494_v54  ;;  %v2917_v46 = vld [vmem:[%s3640_s18 + $0x104] sm:$0xf]  ;;  %v2880_v52 = vld [vmem:[%s3632_s25 + $0x158] sm:$0xf0] }
  0xe7   : > { %1093 = vmatmul.bf16.gmra.mxu0 %v3812_v41  ;;  %1133 = vmatmul.bf16.gmra.mxu2 %v3814_v42  ;;  %v3902_v60 = vor.u32 %v2873_v55, %v2590_v56  ;;  %v2855_v53 = vld [vmem:[%s3632_s25 + $0x94] sm:$0xf]  ;;  %v2518_v54 = vld [vmem:[%s3632_s25 + $0x9c] sm:$0xf0]  ;;  %v3954_v62 = vor.u32 %v2880_v52, %v2612_v51  ;;  %s4470_s29 = sld [smem:[#allocation18_spill]] }
  0xe8   : > { %1182 = vmatmul.bf16.gmra.mxu1 %v3816_v43  ;;  %1262 = vmatpush.bf16.msrb.mxu2 %v2789_v16  ;;  %v2777_v16 = vor.u32 %v2919_v14, %v2774_v15  ;;  %v2879_v55 = vld [vmem:[%s3632_s25 + $0x154] sm:$0xf]  ;;  %v2614_v56 = vld [vmem:[%s3632_s25 + $0x15c] sm:$0xf0]  ;;  %v2530_v14 = vld [vmem:[%s3632_s25 + $0xb4] sm:$0xf0] }
  0xe9   : > { %1351 = vmatpush.bf16.msrb.mxu3 %v2665_v12  ;;  %1440 = vmatpush.bf16.msrb.mxu0 %v2729_v17  ;;  %v2773_v12 = vor.u32 %v2920_v7, %v2772_v63  ;;  %v2504_v17 = vld [vmem:[%s3632_s25 + $0x78] sm:$0xf]  ;;  %v3956_v63 = vor.u32 %v2855_v53, %v2518_v54  ;;  %v2528_v7 = vld [vmem:[%s3632_s25 + $0xa8] sm:$0xf]  ;;  %v2882_v15 = vld [vmem:[%s3632_s25 + $0x16c] sm:$0xf] }
  0xea   : > { %1222 = vmatmul.bf16.gmra.mxu3 %v3818_v44  ;;  %1529 = vmatpush.bf16.msrb.mxu1 %v2793_v20  ;;  %v2877_v20 = vld [vmem:[%s3632_s25 + $0x140] sm:$0xf0]  ;;  %v3924_v25 = vor.u32 %v2853_v18, %v2504_v17  ;;  %v3972_v17 = vor.u32 %v2859_v8, %v2528_v7  ;;  %v2476_v8 = vld [vmem:[%s3632_s25 + $0x38] sm:$0xf] }
  0xeb   : > { %v3926_v26 = vor.u32 %v2877_v20, %v2600_v19 }
  0xec   : > { %1263 = vmatpush.bf16.msrb.mxu2 %v2781_v40  ;;  %v2765_v40 = vor.u32 %v2918_v37, %v2764_v35 }
  0xed   : > { %1352 = vmatpush.bf16.msrb.mxu3 %v2657_v36  ;;  %1441 = vmatpush.bf16.msrb.mxu0 %v2721_v45  ;;  %v2641_v36 = vor.u32 %v2885_v33, %v2638_v34  ;;  %v2705_v45 = vor.u32 %v2901_v38, %v2702_v39  ;;  %p2826_p1 = scmp.ne.s32.totalorder %s4470_s29, 2 }
  0xee   : > { %1530 = vmatpush.bf16.msrb.mxu1 %v2785_v48  ;;  %v2769_v48 = vor.u32 %v2917_v46, %v2766_v47  ;;  %v2842_v46 = vld [vmem:[%s3632_s25 + $0x28] sm:$0xf0] }
  0xf0   : > { %1264 = vmatpush.bf16.msrb.mxu2 %v2773_v12  ;;  %v2883_v12 = vld [vmem:[%s3632_s25 + $0x170] sm:$0xf0] }
  0xf1   : > { %1353 = vmatpush.bf16.msrb.mxu3 %v2649_v0  ;;  %1442 = vmatpush.bf16.msrb.mxu0 %v2713_v13  ;;  %v3958_v0 = vor.u32 %v2879_v55, %v2614_v56  ;;  %v2858_v13 = vld [vmem:[%s3632_s25 + $0xac] sm:$0xf]  ;;  %v3974_v18 = vor.u32 %v2883_v12, %v2624_v11  ;;  %v2845_v11 = vld [vmem:[%s3632_s25 + $0x40] sm:$0xf0] }
  0xf2   : > { %1531 = vmatpush.bf16.msrb.mxu1 %v2777_v16  ;;  %v2626_v16 = vld [vmem:[%s3632_s25 + $0x174] sm:$0xf0]  ;;  %v3976_v19 = vor.u32 %v2858_v13, %v2530_v14  ;;  %v2477_v14 = vor.u32 %v2845_v11, %v2476_v8  ;;  %v2851_v8 = vld [vmem:[%s3632_s25 + $0x70] sm:$0xf0] }
  0xf3   : > { %v3978_v20 = vor.u32 %v2882_v15, %v2626_v16 }
  0xf4   : > { %1265 = vmatpush.bf16.msrb.mxu2 %v2765_v40 }
  0xf5   : > { %1354 = vmatpush.bf16.msrb.mxu3 %v2641_v36  ;;  %1443 = vmatpush.bf16.msrb.mxu0 %v2705_v45  ;;  %v2464_v45 = vld [vmem:[%s3632_s25 + $0x20] sm:$0xf] }
  0xf6   : > { %1532 = vmatpush.bf16.msrb.mxu1 %v2769_v48  ;;  %v2465_v49 = vor.u32 %v2842_v46, %v2464_v45 }
  0xf7   : > { %1098 = vmatmul.bf16.gmra.mxu0 %v3840_v1  ;;  %1138 = vmatmul.bf16.gmra.mxu2 %v3842_v2 }
  0xf8   : > { %1187 = vmatmul.bf16.gmra.mxu1 %v3844_v3 }
  0xfa   : > { %1227 = vmatmul.bf16.gmra.mxu3 %v3846_v6 }
 0x107   : > { %1103 = vmatmul.bf16.gmra.mxu0 %v3868_v29  ;;  %1143 = vmatmul.bf16.gmra.mxu2 %v3870_v30 }
 0x108   : > { %1192 = vmatmul.bf16.gmra.mxu1 %v3872_v31 }
 0x10a   : > { %1232 = vmatmul.bf16.gmra.mxu3 %v3874_v32 }
 0x117   : > { %1108 = vmatmul.bf16.gmra.mxu0 %v3896_v57  ;;  %1148 = vmatmul.bf16.gmra.mxu2 %v3898_v58 }
 0x118   : > { %1197 = vmatmul.bf16.gmra.mxu1 %v3900_v59 }
 0x11a   : > { %1237 = vmatmul.bf16.gmra.mxu3 %v3902_v60 }
 0x127   : > { %1113 = vmatmul.bf16.gmra.mxu0 %v3924_v25  ;;  %1153 = vmatmul.bf16.gmra.mxu2 %v3926_v26 }
 0x128   : > { %1202 = vmatmul.bf16.gmra.mxu1 %v3928_v27 }
 0x12a   : > { %1242 = vmatmul.bf16.gmra.mxu3 %v3930_v28 }
 0x137   : > { %1118 = vmatmul.bf16.gmra.mxu0 %v3952_v61  ;;  %1158 = vmatmul.bf16.gmra.mxu2 %v3954_v62 }
 0x138   : > { %1207 = vmatmul.bf16.gmra.mxu1 %v3956_v63 }
 0x13a   : > { %1247 = vmatmul.bf16.gmra.mxu3 %v3958_v0 }
 0x147   : > { %1123 = vmatmul.bf16.gmra.mxu0 %v3972_v17  ;;  %1163 = vmatmul.bf16.gmra.mxu2 %v3974_v18 }
 0x148   : > { %1212 = vmatmul.bf16.gmra.mxu1 %v3976_v19 }
 0x14a   : > { %1252 = vmatmul.bf16.gmra.mxu3 %v3978_v20 }
 0x154   : > { %v1089_v24 = vpop.f32.mrf.mxu0 }
 0x155   : > { %v1178_v33 = vpop.f32.mrf.mxu1 }
 0x156   : > { %v3986_v34 = vadd.f32 %v1178_v33, %v1089_v24 }
 0x157   : > { %1266 = vmatmul.bf16.vlgmr.msrb.gmra.mxu2 %v2453_v23  ;;  %1444 = vmatmul.bf16.vlgmr.msrb.gmra.mxu0 %v3784_v9 }
 0x158   : > { %1533 = vmatmul.bf16.vlgmr.msrb.gmra.mxu1 %v2453_v23 }
 0x15a   : > { %1355 = vmatmul.bf16.vlgmr.msrb.gmra.mxu3 %v3777_v4  ;;  %v1129_v35 = vpop.f32.mrf.mxu2 }
 0x15c   : > { %v1091_v38 = vpop.f32.mrf.mxu0 }
 0x15d   : > { %v1218_v36 = vpop.f32.mrf.mxu3  ;;  %v1180_v39 = vpop.f32.mrf.mxu1 }
 0x15e   : > { %v3990_v37 = vadd.f32 %v1218_v36, %v1129_v35  ;;  %v3992_v40 = vadd.f32 %v1180_v39, %v1091_v38  ;;  %v2488_v36 = vld [vmem:[%s3632_s25 + $0x50] sm:$0xf]  ;;  %v2848_v38 = vld [vmem:[%s3632_s25 + $0x58] sm:$0xf0] }
 0x15f   : > { %v2489_v46 = vor.u32 %v2848_v38, %v2488_v36  ;;  %v2512_v38 = vld [vmem:[%s3632_s25 + $0x80] sm:$0xf] }
 0x162   : > { %v1131_v47 = vpop.f32.mrf.mxu2 }
 0x164   : > { %v1094_v9 = vpop.f32.mrf.mxu0 }
 0x165   : > { %v1220_v48 = vpop.f32.mrf.mxu3  ;;  %v1183_v4 = vpop.f32.mrf.mxu1 }
 0x166   : > { %v3996_v50 = vadd.f32 %v1220_v48, %v1131_v47  ;;  %v3998_v51 = vadd.f32 %v1183_v4, %v1094_v9 }
 0x167   : > { %1271 = vmatmul.bf16.gmra.mxu2 %v2465_v49  ;;  %1449 = vmatmul.bf16.gmra.mxu0 %v3816_v43 }
 0x168   : > { %1538 = vmatmul.bf16.gmra.mxu1 %v2465_v49 }
 0x16a   : > { %1360 = vmatmul.bf16.gmra.mxu3 %v3812_v41  ;;  %v1134_v52 = vpop.f32.mrf.mxu2 }
 0x16c   : > { %v1096_v55 = vpop.f32.mrf.mxu0 }
 0x16d   : > { %v1223_v53 = vpop.f32.mrf.mxu3  ;;  %v1185_v56 = vpop.f32.mrf.mxu1 }
 0x16e   : > { %v4002_v54 = vadd.f32 %v1223_v53, %v1134_v52  ;;  %v4004_v7 = vadd.f32 %v1185_v56, %v1096_v55  ;;  %v2500_v56 = vld [vmem:[%s3632_s25 + $0x68] sm:$0xf] }
 0x172   : > { %v1136_v12 = vpop.f32.mrf.mxu2 }
 0x174   : > { %v1099_v43 = vpop.f32.mrf.mxu0 }
 0x175   : > { %v1225_v13 = vpop.f32.mrf.mxu3  ;;  %v1188_v41 = vpop.f32.mrf.mxu1 }
 0x176   : > { %v4008_v15 = vadd.f32 %v1225_v13, %v1136_v12  ;;  %v4010_v16 = vadd.f32 %v1188_v41, %v1099_v43  ;;  %v2501_v13 = vor.u32 %v2851_v8, %v2500_v56 }
 0x177   : > { %1276 = vmatmul.bf16.gmra.mxu2 %v2477_v14  ;;  %1454 = vmatmul.bf16.gmra.mxu0 %v3844_v3 }
 0x178   : > { %1543 = vmatmul.bf16.gmra.mxu1 %v2477_v14 }
 0x17a   : > { %1365 = vmatmul.bf16.gmra.mxu3 %v3840_v1  ;;  %v1139_v21 = vpop.f32.mrf.mxu2 }
 0x17c   : > { %v1101_v24 = vpop.f32.mrf.mxu0 }
 0x17d   : > { %v1228_v22 = vpop.f32.mrf.mxu3  ;;  %v1190_v33 = vpop.f32.mrf.mxu1 }
 0x17e   : > { %v4014_v23 = vadd.f32 %v1228_v22, %v1139_v21  ;;  %v4016_v35 = vadd.f32 %v1190_v33, %v1101_v24 }
 0x182   : > { %v1141_v39 = vpop.f32.mrf.mxu2 }
 0x184   : > { %v1104_v3 = vpop.f32.mrf.mxu0 }
 0x185   : > { %v1230_v45 = vpop.f32.mrf.mxu3  ;;  %v1193_v1 = vpop.f32.mrf.mxu1 }
 0x186   : > { %v4020_v47 = vadd.f32 %v1230_v45, %v1141_v39  ;;  %v4022_v48 = vadd.f32 %v1193_v1, %v1104_v3  ;;  %v2854_v39 = vld [vmem:[%s3632_s25 + $0x88] sm:$0xf0] }
 0x187   : > { %1281 = vmatmul.bf16.gmra.mxu2 %v2489_v46  ;;  %1459 = vmatmul.bf16.gmra.mxu0 %v3872_v31  ;;  %v2513_v3 = vor.u32 %v2854_v39, %v2512_v38 }
 0x188   : > { %1548 = vmatmul.bf16.gmra.mxu1 %v2489_v46 }
 0x18a   : > { %1370 = vmatmul.bf16.gmra.mxu3 %v3868_v29  ;;  %v1144_v49 = vpop.f32.mrf.mxu2 }
 0x18c   : > { %v1106_v52 = vpop.f32.mrf.mxu0 }
 0x18d   : > { %v1233_v9 = vpop.f32.mrf.mxu3  ;;  %v1195_v53 = vpop.f32.mrf.mxu1 }
 0x18e   : > { %v4026_v4 = vadd.f32 %v1233_v9, %v1144_v49  ;;  %v4028_v55 = vadd.f32 %v1195_v53, %v1106_v52 }
 0x192   : > { %v1146_v11 = vpop.f32.mrf.mxu2 }
 0x194   : > { %v1109_v31 = vpop.f32.mrf.mxu0 }
 0x195   : > { %v1235_v12 = vpop.f32.mrf.mxu3  ;;  %v1198_v29 = vpop.f32.mrf.mxu1 }
 0x196   : > { %v4032_v14 = vadd.f32 %v1235_v12, %v1146_v11  ;;  %v4034_v43 = vadd.f32 %v1198_v29, %v1109_v31  ;;  %v2524_v12 = vld [vmem:[%s3632_s25 + $0x98] sm:$0xf] }
 0x197   : > { %1286 = vmatmul.bf16.gmra.mxu2 %v2501_v13  ;;  %1464 = vmatmul.bf16.gmra.mxu0 %v3900_v59 }
 0x198   : > { %1553 = vmatmul.bf16.gmra.mxu1 %v2501_v13  ;;  %v2857_v13 = vld [vmem:[%s3632_s25 + $0xa0] sm:$0xf0] }
 0x19a   : > { %1375 = vmatmul.bf16.gmra.mxu3 %v3896_v57  ;;  %v1149_v41 = vpop.f32.mrf.mxu2 }
 0x19c   : > { %v1111_v24 = vpop.f32.mrf.mxu0 }
 0x19d   : > { %v1238_v21 = vpop.f32.mrf.mxu3  ;;  %v1200_v33 = vpop.f32.mrf.mxu1 }
 0x19e   : > { %v4038_v22 = vadd.f32 %v1238_v21, %v1149_v41  ;;  %v4040_v36 = vadd.f32 %v1200_v33, %v1111_v24  ;;  %v2525_v41 = vor.u32 %v2857_v13, %v2524_v12 }
 0x1a2   : > { %v1151_v45 = vpop.f32.mrf.mxu2 }
 0x1a4   : > { %v1114_v59 = vpop.f32.mrf.mxu0 }
 0x1a5   : > { %v1240_v46 = vpop.f32.mrf.mxu3  ;;  %v1203_v57 = vpop.f32.mrf.mxu1 }
 0x1a6   : > { %v4044_v1 = vadd.f32 %v1240_v46, %v1151_v45  ;;  %v4046_v49 = vadd.f32 %v1203_v57, %v1114_v59  ;;  %v2536_v59 = vld [vmem:[%s3632_s25 + $0xb0] sm:$0xf]  ;;  %v2860_v57 = vld [vmem:[%s3632_s25 + $0xb8] sm:$0xf0] }
 0x1a7   : > { %1291 = vmatmul.bf16.gmra.mxu2 %v2513_v3  ;;  %1469 = vmatmul.bf16.gmra.mxu0 %v3928_v27 }
 0x1a8   : > { %1558 = vmatmul.bf16.gmra.mxu1 %v2513_v3 }
 0x1aa   : > { %1380 = vmatmul.bf16.gmra.mxu3 %v3924_v25  ;;  %v1154_v9 = vpop.f32.mrf.mxu2 }
 0x1ac   : > { %v1116_v56 = vpop.f32.mrf.mxu0 }
 0x1ad   : > { %v1243_v52 = vpop.f32.mrf.mxu3  ;;  %v1205_v8 = vpop.f32.mrf.mxu1 }
 0x1ae   : > { %v4050_v53 = vadd.f32 %v1243_v52, %v1154_v9  ;;  %v4052_v11 = vadd.f32 %v1205_v8, %v1116_v56  ;;  %v2537_v56 = vor.u32 %v2860_v57, %v2536_v59 }
 0x1b2   : > { %v1156_v31 = vpop.f32.mrf.mxu2 }
 0x1b4   : > { %v1119_v27 = vpop.f32.mrf.mxu0 }
 0x1b5   : > { %v1245_v29 = vpop.f32.mrf.mxu3  ;;  %v1208_v25 = vpop.f32.mrf.mxu1 }
 0x1b6   : > { %v4056_v21 = vadd.f32 %v1245_v29, %v1156_v31  ;;  %v4058_v24 = vadd.f32 %v1208_v25, %v1119_v27 }
 0x1b7   : > { %1296 = vmatmul.bf16.gmra.mxu2 %v2525_v41  ;;  %1474 = vmatmul.bf16.gmra.mxu0 %v3956_v63 }
 0x1b8   : > { %1563 = vmatmul.bf16.gmra.mxu1 %v2525_v41 }
 0x1ba   : > { %1385 = vmatmul.bf16.gmra.mxu3 %v3952_v61  ;;  %v1159_v33 = vpop.f32.mrf.mxu2 }
 0x1bc   : > { %v1121_v45 = vpop.f32.mrf.mxu0 }
 0x1bd   : > { %v1248_v38 = vpop.f32.mrf.mxu3  ;;  %v1210_v46 = vpop.f32.mrf.mxu1 }
 0x1be   : > { %v4062_v39 = vadd.f32 %v1248_v38, %v1159_v33  ;;  %v4064_v3 = vadd.f32 %v1210_v46, %v1121_v45  ;;  %v2548_v33 = vld [vmem:[%s3632_s25 + $0xc8] sm:$0xf]  ;;  %v2863_v38 = vld [vmem:[%s3632_s25 + $0xd0] sm:$0xf0] }
 0x1bf   : > { %v2549_v59 = vor.u32 %v2863_v38, %v2548_v33 }
 0x1c2   : > { %v1161_v9 = vpop.f32.mrf.mxu2 }
 0x1c4   : > { %v1124_v63 = vpop.f32.mrf.mxu0 }
 0x1c5   : > { %v1250_v52 = vpop.f32.mrf.mxu3  ;;  %v1213_v61 = vpop.f32.mrf.mxu1 }
 0x1c6   : > { %v4068_v8 = vadd.f32 %v1250_v52, %v1161_v9  ;;  %v4070_v12 = vadd.f32 %v1213_v61, %v1124_v63 }
 0x1c7   : > { %1301 = vmatmul.bf16.gmra.mxu2 %v2537_v56  ;;  %1479 = vmatmul.bf16.gmra.mxu0 %v3976_v19 }
 0x1c8   : > { %4464 = vst [vmem:[#allocation28_spill] sm:$0xff] %v4068_v8  ;;  %1568 = vmatmul.bf16.gmra.mxu1 %v2537_v56 }
 0x1ca   : > { %1390 = vmatmul.bf16.gmra.mxu3 %v3972_v17  ;;  %v1164_v13 = vpop.f32.mrf.mxu2  ;;  %v408_v17 = vld [vmem:[#allocation2 + $0xb0] sm:$0xff] }
 0x1cc   : > { %v1126_v41 = vpop.f32.mrf.mxu0 }
 0x1cd   : > { %v1253_v31 = vpop.f32.mrf.mxu3  ;;  %v1215_v27 = vpop.f32.mrf.mxu1 }
 0x1ce   : > { %v4074_v29 = vadd.f32 %v1253_v31, %v1164_v13  ;;  %v4076_v25 = vadd.f32 %v1215_v27, %v1126_v41  ;;  %v409_v41 = vld [vmem:[#allocation2 + $0x1b0] sm:$0xff] }
 0x1d0   : > { %4465 = vst [vmem:[#allocation29_spill] sm:$0xff] %v4074_v29 }
 0x1d2   : > { %v1166_v45 = vpop.f32.mrf.mxu2 }
 0x1d4   : > { %v1445_v9 = vpop.f32.mrf.mxu0 }
 0x1d5   : > { %v1255_v46 = vpop.f32.mrf.mxu3  ;;  %v1534_v19 = vpop.f32.mrf.mxu1 }
 0x1d6   : > { %v4080_v57 = vadd.f32 %v1255_v46, %v1166_v45  ;;  %v2560_v45 = vld [vmem:[%s3632_s25 + $0xe0] sm:$0xf]  ;;  %v2866_v46 = vld [vmem:[%s3632_s25 + $0xe8] sm:$0xf0] }
 0x1d7   : > { %1306 = vmatmul.bf16.gmra.mxu2 %v2549_v59  ;;  %1484 = vmatmul.bf16.gmra.mxu0 %v3786_v10  ;;  %v410_v10 = vld [vmem:[#allocation2 + $0xd8] sm:$0xff]  ;;  %v2561_v29 = vor.u32 %v2866_v46, %v2560_v45  ;;  %v2869_v45 = vld [vmem:[%s3632_s25 + $0x100] sm:$0xf0] }
 0x1d8   : > { %4466 = vst [vmem:[#allocation30_spill] sm:$0xff] %v4080_v57  ;;  %1573 = vmatmul.bf16.gmra.mxu1 %v2549_v59 }
 0x1da   : > { %1395 = vmatmul.bf16.gmra.mxu3 %v3779_v5  ;;  %v1267_v52 = vpop.f32.mrf.mxu2 }
 0x1db   : > { %v1268_v56 = vadd.f32 %v1267_v52, %v3986_v34 }
 0x1dc   : > { %v1447_v13 = vpop.f32.mrf.mxu0 }
 0x1dd   : > { %v1356_v63 = vpop.f32.mrf.mxu3  ;;  %v1614_v31 = vadd.f32 %v1268_v56, %v408_v17  ;;  %v1536_v27 = vpop.f32.mrf.mxu1 }
 0x1de   : > { %v1446_v61 = vadd.f32 %v1445_v9, %v1356_v63  ;;  %v411_v9 = vld [vmem:[#allocation2 + $0x18] sm:$0xff] }
 0x1df   : > { %1678 = vst [vmem:[#allocation2 + $0xb0] sm:$0xff] %v1614_v31 }
 0x1e0   : > { %v1535_v33 = vadd.f32 %v1534_v19, %v1446_v61 }
 0x1e2   : > { %v1615_v38 = vadd.f32 %v1535_v33, %v409_v41  ;;  %v1269_v57 = vpop.f32.mrf.mxu2 }
 0x1e3   : > { %v1270_v5 = vadd.f32 %v1269_v57, %v3992_v40  ;;  %v412_v40 = vld [vmem:[#allocation2 + $0x50] sm:$0xff] }
 0x1e4   : > { %1679 = vst [vmem:[#allocation2 + $0x1b0] sm:$0xff] %v1615_v38  ;;  %v1450_v34 = vpop.f32.mrf.mxu0  ;;  %v2572_v38 = vld [vmem:[%s3632_s25 + $0xf8] sm:$0xf] }
 0x1e5   : > { %v1358_v59 = vpop.f32.mrf.mxu3  ;;  %v1616_v52 = vadd.f32 %v1270_v5, %v410_v10  ;;  %v1539_v63 = vpop.f32.mrf.mxu1  ;;  %v2573_v5 = vor.u32 %v2869_v45, %v2572_v38 }
 0x1e6   : > { %v1448_v8 = vadd.f32 %v1447_v13, %v1358_v59 }
 0x1e7   : > { %1680 = vst [vmem:[#allocation2 + $0xd8] sm:$0xff] %v1616_v52  ;;  %1311 = vmatmul.bf16.gmra.mxu2 %v2561_v29  ;;  %1489 = vmatmul.bf16.gmra.mxu0 %v3818_v44 }
 0x1e8   : > { %v1537_v17 = vadd.f32 %v1536_v27, %v1448_v8  ;;  %1578 = vmatmul.bf16.gmra.mxu1 %v2561_v29  ;;  %v413_v8 = vld [vmem:[#allocation2 + $0x168] sm:$0xff] }
 0x1ea   : > { %v1617_v19 = vadd.f32 %v1537_v17, %v411_v9  ;;  %1400 = vmatmul.bf16.gmra.mxu3 %v3814_v42  ;;  %v1272_v57 = vpop.f32.mrf.mxu2  ;;  %v414_v42 = vld [vmem:[#allocation2 + $0x130] sm:$0xff] }
 0x1eb   : > { %v1273_v56 = vadd.f32 %v1272_v57, %v3998_v51 }
 0x1ec   : > { %1681 = vst [vmem:[#allocation2 + $0x18] sm:$0xff] %v1617_v19  ;;  %v1452_v31 = vpop.f32.mrf.mxu0 }
 0x1ed   : > { %v1361_v61 = vpop.f32.mrf.mxu3  ;;  %v1618_v41 = vadd.f32 %v1273_v56, %v412_v40  ;;  %v1541_v27 = vpop.f32.mrf.mxu1 }
 0x1ee   : > { %v1451_v13 = vadd.f32 %v1450_v34, %v1361_v61  ;;  %v415_v34 = vld [vmem:[#allocation2 + $0x48] sm:$0xff] }
 0x1ef   : > { %1682 = vst [vmem:[#allocation2 + $0x50] sm:$0xff] %v1618_v41 }
 0x1f0   : > { %v1540_v33 = vadd.f32 %v1539_v63, %v1451_v13 }
 0x1f2   : > { %v1619_v44 = vadd.f32 %v1540_v33, %v413_v8  ;;  %v1274_v46 = vpop.f32.mrf.mxu2  ;;  %v2872_v33 = vld [vmem:[%s3632_s25 + $0x118] sm:$0xf0] }
 0x1f3   : > { %v1275_v29 = vadd.f32 %v1274_v46, %v4004_v7  ;;  %v416_v7 = vld [vmem:[#allocation2 + $0x180] sm:$0xff] }
 0x1f4   : > { %1683 = vst [vmem:[#allocation2 + $0x168] sm:$0xff] %v1619_v44  ;;  %v1455_v51 = vpop.f32.mrf.mxu0 }
 0x1f5   : > { %v1363_v10 = vpop.f32.mrf.mxu3  ;;  %v1620_v52 = vadd.f32 %v1275_v29, %v414_v42  ;;  %v1544_v9 = vpop.f32.mrf.mxu1 }
 0x1f6   : > { %v1453_v59 = vadd.f32 %v1452_v31, %v1363_v10  ;;  %v417_v31 = vld [vmem:[#allocation2 + $0x110] sm:$0xff]  ;;  %v419_v10 = vld [vmem:[#allocation2 + $0x98] sm:$0xff] }
 0x1f7   : > { %1684 = vst [vmem:[#allocation2 + $0x130] sm:$0xff] %v1620_v52  ;;  %1316 = vmatmul.bf16.gmra.mxu2 %v2573_v5  ;;  %1494 = vmatmul.bf16.gmra.mxu0 %v3846_v6 }
 0x1f8   : > { %v1542_v17 = vadd.f32 %v1541_v27, %v1453_v59  ;;  %1583 = vmatmul.bf16.gmra.mxu1 %v2573_v5  ;;  %v2584_v27 = vld [vmem:[%s3632_s25 + $0x110] sm:$0xf] }
 0x1f9   : > { %v2585_v42 = vor.u32 %v2872_v33, %v2584_v27  ;;  %v423_v33 = vld [vmem:[#allocation2 + $0x60] sm:$0xff] }
 0x1fa   : > { %v1621_v63 = vadd.f32 %v1542_v17, %v415_v34  ;;  %1405 = vmatmul.bf16.gmra.mxu3 %v3842_v2  ;;  %v1277_v19 = vpop.f32.mrf.mxu2  ;;  %v418_v2 = vld [vmem:[#allocation2 + $0x118] sm:$0xff] }
 0x1fb   : > { %v1278_v40 = vadd.f32 %v1277_v19, %v4010_v16  ;;  %v421_v19 = vld [vmem:[#allocation2 + $0x150] sm:$0xff] }
 0x1fc   : > { %1685 = vst [vmem:[#allocation2 + $0x48] sm:$0xff] %v1621_v63  ;;  %v1457_v61 = vpop.f32.mrf.mxu0 }
 0x1fd   : > { %v1366_v57 = vpop.f32.mrf.mxu3  ;;  %v1622_v13 = vadd.f32 %v1278_v40, %v416_v7  ;;  %v1546_v41 = vpop.f32.mrf.mxu1 }
 0x1fe   : > { %v1456_v56 = vadd.f32 %v1455_v51, %v1366_v57 }
 0x1ff   : > { %1686 = vst [vmem:[#allocation2 + $0x180] sm:$0xff] %v1622_v13 }
 0x200   : > { %v1545_v8 = vadd.f32 %v1544_v9, %v1456_v56  ;;  %v2596_v56 = vld [vmem:[%s3632_s25 + $0x128] sm:$0xf] }
 0x202   : > { %v1623_v6 = vadd.f32 %v1545_v8, %v417_v31  ;;  %v1279_v44 = vpop.f32.mrf.mxu2 }
 0x203   : > { %v1280_v38 = vadd.f32 %v1279_v44, %v4016_v35  ;;  %v420_v35 = vld [vmem:[#allocation2 + $0x120] sm:$0xff] }
 0x204   : > { %1687 = vst [vmem:[#allocation2 + $0x110] sm:$0xff] %v1623_v6  ;;  %v1460_v16 = vpop.f32.mrf.mxu0 }
 0x205   : > { %v1368_v45 = vpop.f32.mrf.mxu3  ;;  %v1624_v29 = vadd.f32 %v1280_v38, %v418_v2  ;;  %v1549_v5 = vpop.f32.mrf.mxu1 }
 0x206   : > { %v1458_v46 = vadd.f32 %v1457_v61, %v1368_v45  ;;  %v2875_v61 = vld [vmem:[%s3632_s25 + $0x130] sm:$0xf0] }
 0x207   : > { %1688 = vst [vmem:[#allocation2 + $0x118] sm:$0xff] %v1624_v29  ;;  %1321 = vmatmul.bf16.gmra.mxu2 %v2585_v42  ;;  %1499 = vmatmul.bf16.gmra.mxu0 %v3874_v32  ;;  %v2597_v8 = vor.u32 %v2875_v61, %v2596_v56 }
 0x208   : > { %v1547_v59 = vadd.f32 %v1546_v41, %v1458_v46  ;;  %1588 = vmatmul.bf16.gmra.mxu1 %v2585_v42 }
 0x20a   : > { %v1625_v51 = vadd.f32 %v1547_v59, %v419_v10  ;;  %1410 = vmatmul.bf16.gmra.mxu3 %v3870_v30  ;;  %v1282_v52 = vpop.f32.mrf.mxu2  ;;  %v422_v30 = vld [vmem:[#allocation2 + $0x108] sm:$0xff] }
 0x20b   : > { %v1283_v34 = vadd.f32 %v1282_v52, %v4022_v48  ;;  %v2878_v52 = vld [vmem:[%s3632_s25 + $0x148] sm:$0xf0] }
 0x20c   : > { %1689 = vst [vmem:[#allocation2 + $0x98] sm:$0xff] %v1625_v51  ;;  %v1462_v63 = vpop.f32.mrf.mxu0 }
 0x20d   : > { %v1371_v9 = vpop.f32.mrf.mxu3  ;;  %v1626_v7 = vadd.f32 %v1283_v34, %v420_v35  ;;  %v1551_v40 = vpop.f32.mrf.mxu1  ;;  %v2608_v35 = vld [vmem:[%s3632_s25 + $0x140] sm:$0xf] }
 0x20e   : > { %v1461_v17 = vadd.f32 %v1460_v16, %v1371_v9 }
 0x20f   : > { %1690 = vst [vmem:[#allocation2 + $0x120] sm:$0xff] %v1626_v7 }
 0x210   : > { %v1550_v57 = vadd.f32 %v1549_v5, %v1461_v17  ;;  %v425_v5 = vld [vmem:[#allocation2 + $0x188] sm:$0xff] }
 0x212   : > { %v1627_v32 = vadd.f32 %v1550_v57, %v421_v19  ;;  %v1284_v13 = vpop.f32.mrf.mxu2 }
 0x213   : > { %v1285_v31 = vadd.f32 %v1284_v13, %v4028_v55  ;;  %v424_v55 = vld [vmem:[#allocation2 + $0xe0] sm:$0xff] }
 0x214   : > { %1691 = vst [vmem:[#allocation2 + $0x150] sm:$0xff] %v1627_v32  ;;  %v1465_v48 = vpop.f32.mrf.mxu0 }
 0x215   : > { %v1373_v41 = vpop.f32.mrf.mxu3  ;;  %v1628_v27 = vadd.f32 %v1285_v31, %v422_v30  ;;  %v1554_v2 = vpop.f32.mrf.mxu1 }
 0x216   : > { %v1463_v6 = vadd.f32 %v1462_v63, %v1373_v41  ;;  %v2609_v63 = vor.u32 %v2878_v52, %v2608_v35 }
 0x217   : > { %1692 = vst [vmem:[#allocation2 + $0x108] sm:$0xff] %v1628_v27  ;;  %1326 = vmatmul.bf16.gmra.mxu2 %v2597_v8  ;;  %1504 = vmatmul.bf16.gmra.mxu0 %v3902_v60 }
 0x218   : > { %v1552_v44 = vadd.f32 %v1551_v40, %v1463_v6  ;;  %1593 = vmatmul.bf16.gmra.mxu1 %v2597_v8  ;;  %v427_v40 = vld [vmem:[#allocation2 + $0x140] sm:$0xff]  ;;  %v429_v6 = vld [vmem:[#allocation2 + $0x1a8] sm:$0xff] }
 0x21a   : > { %v1629_v38 = vadd.f32 %v1552_v44, %v423_v33  ;;  %1415 = vmatmul.bf16.gmra.mxu3 %v3898_v58  ;;  %v1287_v45 = vpop.f32.mrf.mxu2  ;;  %v426_v58 = vld [vmem:[#allocation2 + $0x138] sm:$0xff] }
 0x21b   : > { %v1288_v42 = vadd.f32 %v1287_v45, %v4034_v43  ;;  %v2620_v33 = vld [vmem:[%s3632_s25 + $0x158] sm:$0xf] }
 0x21c   : > { %1693 = vst [vmem:[#allocation2 + $0x60] sm:$0xff] %v1629_v38  ;;  %v1467_v29 = vpop.f32.mrf.mxu0 }
 0x21d   : > { %v1376_v46 = vpop.f32.mrf.mxu3  ;;  %v1630_v10 = vadd.f32 %v1288_v42, %v424_v55  ;;  %v1556_v59 = vpop.f32.mrf.mxu1 }
 0x21e   : > { %v1466_v16 = vadd.f32 %v1465_v48, %v1376_v46 }
 0x21f   : > { %1694 = vst [vmem:[#allocation2 + $0xe0] sm:$0xff] %v1630_v10 }
 0x220   : > { %v1555_v51 = vadd.f32 %v1554_v2, %v1466_v16  ;;  %v2881_v2 = vld [vmem:[%s3632_s25 + $0x160] sm:$0xf0]  ;;  %v431_v16 = vld [vmem:[#allocation2 + $0x28] sm:$0xff] }
 0x221   : > { %v2621_v45 = vor.u32 %v2881_v2, %v2620_v33 }
 0x222   : > { %v1631_v60 = vadd.f32 %v1555_v51, %v425_v5  ;;  %v1289_v34 = vpop.f32.mrf.mxu2 }
 0x223   : > { %v1290_v9 = vadd.f32 %v1289_v34, %v4040_v36  ;;  %v428_v36 = vld [vmem:[#allocation2 + $0x80] sm:$0xff]  ;;  %v433_v34 = vld [vmem:[#allocation2 + $0xf8] sm:$0xff] }
 0x224   : > { %1695 = vst [vmem:[#allocation2 + $0x188] sm:$0xff] %v1631_v60  ;;  %v1470_v43 = vpop.f32.mrf.mxu0 }
 0x225   : > { %v1378_v17 = vpop.f32.mrf.mxu3  ;;  %v1632_v19 = vadd.f32 %v1290_v9, %v426_v58  ;;  %v1559_v57 = vpop.f32.mrf.mxu1 }
 0x226   : > { %v1468_v7 = vadd.f32 %v1467_v29, %v1378_v17 }
 0x227   : > { %1696 = vst [vmem:[#allocation2 + $0x138] sm:$0xff] %v1632_v19  ;;  %1331 = vmatmul.bf16.gmra.mxu2 %v2609_v63  ;;  %1509 = vmatmul.bf16.gmra.mxu0 %v3930_v28 }
 0x228   : > { %v1557_v32 = vadd.f32 %v1556_v59, %v1468_v7  ;;  %1598 = vmatmul.bf16.gmra.mxu1 %v2609_v63  ;;  %v2632_v63 = vld [vmem:[%s3632_s25 + $0x170] sm:$0xf]  ;;  %v2884_v7 = vld [vmem:[%s3632_s25 + $0x178] sm:$0xf0] }
 0x22a   : > { %v1633_v56 = vadd.f32 %v1557_v32, %v427_v40  ;;  %1420 = vmatmul.bf16.gmra.mxu3 %v3926_v26  ;;  %v1292_v61 = vpop.f32.mrf.mxu2  ;;  %v430_v26 = vld [vmem:[#allocation2 + $0x1b8] sm:$0xff] }
 0x22b   : > { %v1293_v30 = vadd.f32 %v1292_v61, %v4046_v49 }
 0x22c   : > { %1697 = vst [vmem:[#allocation2 + $0x140] sm:$0xff] %v1633_v56  ;;  %v1472_v41 = vpop.f32.mrf.mxu0 }
 0x22d   : > { %v1381_v13 = vpop.f32.mrf.mxu3  ;;  %v1634_v8 = vadd.f32 %v1293_v30, %v428_v36  ;;  %v1561_v48 = vpop.f32.mrf.mxu1  ;;  %v435_v36 = vld [vmem:[#allocation2 + $0x30] sm:$0xff] }
 0x22e   : > { %v1471_v31 = vadd.f32 %v1470_v43, %v1381_v13 }
 0x22f   : > { %1698 = vst [vmem:[#allocation2 + $0x80] sm:$0xff] %v1634_v8 }
 0x230   : > { %v1560_v27 = vadd.f32 %v1559_v57, %v1471_v31  ;;  %v2633_v57 = vor.u32 %v2884_v7, %v2632_v63  ;;  %v436_v31 = vld [vmem:[#allocation2 + $0x1e0] sm:$0xff] }
 0x232   : > { %v1635_v28 = vadd.f32 %v1560_v27, %v429_v6  ;;  %v1294_v44 = vpop.f32.mrf.mxu2 }
 0x233   : > { %v1295_v38 = vadd.f32 %v1294_v44, %v4052_v11  ;;  %v432_v11 = vld [vmem:[#allocation2 + $0x1e8] sm:$0xff] }
 0x234   : > { %1699 = vst [vmem:[#allocation2 + $0x1a8] sm:$0xff] %v1635_v28  ;;  %v1475_v49 = vpop.f32.mrf.mxu0  ;;  %v437_v28 = vld [vmem:[#allocation2] sm:$0xff] }
 0x235   : > { %v1383_v55 = vpop.f32.mrf.mxu3  ;;  %v1636_v46 = vadd.f32 %v1295_v38, %v430_v26  ;;  %v1564_v29 = vpop.f32.mrf.mxu1 }
 0x236   : > { %v1473_v42 = vadd.f32 %v1472_v41, %v1383_v55 }
 0x237   : > { %1700 = vst [vmem:[#allocation2 + $0x1b8] sm:$0xff] %v1636_v46  ;;  %1336 = vmatmul.bf16.gmra.mxu2 %v2621_v45  ;;  %1514 = vmatmul.bf16.gmra.mxu0 %v3958_v0 }
 0x238   : > { %v1562_v10 = vadd.f32 %v1561_v48, %v1473_v42  ;;  %1603 = vmatmul.bf16.gmra.mxu1 %v2621_v45 }
 0x23a   : > { %v1637_v5 = vadd.f32 %v1562_v10, %v431_v16  ;;  %1425 = vmatmul.bf16.gmra.mxu3 %v3954_v62  ;;  %v1297_v59 = vpop.f32.mrf.mxu2  ;;  %v434_v62 = vld [vmem:[#allocation2 + $0x160] sm:$0xff] }
 0x23b   : > { %v1298_v51 = vadd.f32 %v1297_v59, %v4058_v24 }
 0x23c   : > { %1701 = vst [vmem:[#allocation2 + $0x28] sm:$0xff] %v1637_v5  ;;  %v1477_v52 = vpop.f32.mrf.mxu0 }
 0x23d   : > { %v1386_v60 = vpop.f32.mrf.mxu3  ;;  %v1638_v58 = vadd.f32 %v1298_v51, %v432_v11  ;;  %v1566_v9 = vpop.f32.mrf.mxu1 }
 0x23e   : > { %v1476_v35 = vadd.f32 %v1475_v49, %v1386_v60  ;;  %v439_v49 = vld [vmem:[#allocation2 + $0x8] sm:$0xff] }
 0x23f   : > { %1702 = vst [vmem:[#allocation2 + $0x1e8] sm:$0xff] %v1638_v58 }
 0x240   : > { %v1565_v17 = vadd.f32 %v1564_v29, %v1476_v35  ;;  %v440_v29 = vld [vmem:[#allocation2 + $0x148] sm:$0xff]  ;;  %v441_v35 = vld [vmem:[#allocation2 + $0x1d0] sm:$0xff] }
 0x242   : > { %v1639_v0 = vadd.f32 %v1565_v17, %v433_v34  ;;  %v1299_v43 = vpop.f32.mrf.mxu2  ;;  %v442_v34 = vld [vmem:[#allocation2 + $0x100] sm:$0xff] }
 0x243   : > { %v1300_v19 = vadd.f32 %v1299_v43, %v4064_v3  ;;  %v443_v43 = vld [vmem:[#allocation2 + $0xc8] sm:$0xff] }
 0x244   : > { %1703 = vst [vmem:[#allocation2 + $0xf8] sm:$0xff] %v1639_v0  ;;  %v1480_v24 = vpop.f32.mrf.mxu0 }
 0x245   : > { %v1388_v40 = vpop.f32.mrf.mxu3  ;;  %v1640_v56 = vadd.f32 %v1300_v19, %v434_v62  ;;  %v1569_v61 = vpop.f32.mrf.mxu1 }
 0x246   : > { %v1478_v32 = vadd.f32 %v1477_v52, %v1388_v40 }
 0x247   : > { %1704 = vst [vmem:[#allocation2 + $0x160] sm:$0xff] %v1640_v56  ;;  %1341 = vmatmul.bf16.gmra.mxu2 %v2633_v57  ;;  %1519 = vmatmul.bf16.gmra.mxu0 %v3978_v20  ;;  %v438_v20 = vld [vmem:[#allocation2 + $0xf0] sm:$0xff] }
 0x248   : > { %v1567_v30 = vadd.f32 %v1566_v9, %v1478_v32  ;;  %1608 = vmatmul.bf16.gmra.mxu1 %v2633_v57  ;;  %v444_v57 = vld [vmem:[#allocation2 + $0x40] sm:$0xff] }
 0x24a   : > { %v1641_v13 = vadd.f32 %v1567_v30, %v435_v36  ;;  %1430 = vmatmul.bf16.gmra.mxu3 %v3974_v18  ;;  %v1302_v41 = vpop.f32.mrf.mxu2 }
 0x24b   : > { %v1303_v3 = vadd.f32 %v1302_v41, %v4070_v12 }
 0x24c   : > { %1705 = vst [vmem:[#allocation2 + $0x30] sm:$0xff] %v1641_v13  ;;  %v1482_v48 = vpop.f32.mrf.mxu0  ;;  %v445_v13 = vld [vmem:[#allocation2 + $0x1f8] sm:$0xff] }
 0x24d   : > { %v1391_v8 = vpop.f32.mrf.mxu3  ;;  %v1642_v27 = vadd.f32 %v1303_v3, %v436_v31  ;;  %v1571_v33 = vpop.f32.mrf.mxu1  ;;  %v446_v3 = vld [vmem:[#allocation2 + $0x20] sm:$0xff] }
 0x24e   : > { %v1481_v6 = vadd.f32 %v1480_v24, %v1391_v8 }
 0x24f   : > { %1706 = vst [vmem:[#allocation2 + $0x1e0] sm:$0xff] %v1642_v27 }
 0x250   : > { %v1570_v2 = vadd.f32 %v1569_v61, %v1481_v6 }
 0x252   : > { %v1643_v26 = vadd.f32 %v1570_v2, %v437_v28  ;;  %v1304_v44 = vpop.f32.mrf.mxu2  ;;  %v447_v2 = vld [vmem:[#allocation2 + $0x128] sm:$0xff] }
 0x253   : > { %v1305_v18 = vadd.f32 %v1304_v44, %v4076_v25  ;;  %v448_v44 = vld [vmem:[#allocation2 + $0x1a0] sm:$0xff] }
 0x254   : > { %1707 = vst [vmem:[#allocation2] sm:$0xff] %v1643_v26  ;;  %v1485_v45 = vpop.f32.mrf.mxu0 }
 0x255   : > { %v1393_v38 = vpop.f32.mrf.mxu3  ;;  %v1644_v42 = vadd.f32 %v1305_v18, %v438_v20  ;;  %v1574_v12 = vpop.f32.mrf.mxu1 }
 0x256   : > { %v1483_v55 = vadd.f32 %v1482_v48, %v1393_v38 }
 0x257   : > { %1708 = vst [vmem:[#allocation2 + $0xf0] sm:$0xff] %v1644_v42 }
 0x258   : > { %v1572_v46 = vadd.f32 %v1571_v33, %v1483_v55 }
 0x25a   : > { %v1645_v16 = vadd.f32 %v1572_v46, %v439_v49  ;;  %v1307_v10 = vpop.f32.mrf.mxu2 }
 0x25b   : > { %v1308_v5 = vadd.f32 %v1307_v10, %v3990_v37 }
 0x25c   : > { %1709 = vst [vmem:[#allocation2 + $0x8] sm:$0xff] %v1645_v16  ;;  %v1487_v51 = vpop.f32.mrf.mxu0 }
 0x25d   : > { %v1396_v11 = vpop.f32.mrf.mxu3  ;;  %v1646_v60 = vadd.f32 %v1308_v5, %v440_v29  ;;  %v1576_v25 = vpop.f32.mrf.mxu1  ;;  %v450_v29 = vld [vmem:[#allocation2 + $0xe8] sm:$0xff] }
 0x25e   : > { %v1486_v59 = vadd.f32 %v1485_v45, %v1396_v11 }
 0x25f   : > { %1710 = vst [vmem:[#allocation2 + $0x148] sm:$0xff] %v1646_v60 }
 0x260   : > { %v1575_v52 = vadd.f32 %v1574_v12, %v1486_v59  ;;  %v449_v12 = vld [vmem:[#allocation2 + $0x1f0] sm:$0xff] }
 0x262   : > { %v1647_v58 = vadd.f32 %v1575_v52, %v441_v35  ;;  %v1309_v9 = vpop.f32.mrf.mxu2  ;;  %v451_v35 = vld [vmem:[#allocation2 + $0x78] sm:$0xff] }
 0x263   : > { %v1310_v17 = vadd.f32 %v1309_v9, %v3996_v50 }
 0x264   : > { %1711 = vst [vmem:[#allocation2 + $0x1d0] sm:$0xff] %v1647_v58  ;;  %v1490_v7 = vpop.f32.mrf.mxu0  ;;  %v452_v58 = vld [vmem:[#allocation2 + $0x70] sm:$0xff] }
 0x265   : > { %v1398_v0 = vpop.f32.mrf.mxu3  ;;  %v1648_v62 = vadd.f32 %v1310_v17, %v442_v34  ;;  %v1579_v37 = vpop.f32.mrf.mxu1 }
 0x266   : > { %v1488_v63 = vadd.f32 %v1487_v51, %v1398_v0 }
 0x267   : > { %1712 = vst [vmem:[#allocation2 + $0x100] sm:$0xff] %v1648_v62  ;;  %v453_v62 = vld [vmem:[#allocation2 + $0x90] sm:$0xff] }
 0x268   : > { %v1577_v19 = vadd.f32 %v1576_v25, %v1488_v63 }
 0x26a   : > { %v1649_v40 = vadd.f32 %v1577_v19, %v443_v43  ;;  %v1312_v32 = vpop.f32.mrf.mxu2  ;;  %v454_v19 = vld [vmem:[#allocation2 + $0x1d8] sm:$0xff] }
 0x26b   : > { %v1313_v24 = vadd.f32 %v1312_v32, %v4002_v54 }
 0x26c   : > { %1713 = vst [vmem:[#allocation2 + $0xc8] sm:$0xff] %v1649_v40  ;;  %v1492_v61 = vpop.f32.mrf.mxu0 }
 0x26d   : > { %v1401_v56 = vpop.f32.mrf.mxu3  ;;  %v1650_v30 = vadd.f32 %v1313_v24, %v444_v57  ;;  %v1581_v50 = vpop.f32.mrf.mxu1 }
 0x26e   : > { %v1491_v36 = vadd.f32 %v1490_v7, %v1401_v56 }
 0x26f   : > { %1714 = vst [vmem:[#allocation2 + $0x40] sm:$0xff] %v1650_v30 }
 0x270   : > { %v1580_v31 = vadd.f32 %v1579_v37, %v1491_v36 }
 0x272   : > { %v1651_v41 = vadd.f32 %v1580_v31, %v445_v13  ;;  %v1314_v8 = vpop.f32.mrf.mxu2 }
 0x273   : > { %v1315_v6 = vadd.f32 %v1314_v8, %v4008_v15 }
 0x274   : > { %1715 = vst [vmem:[#allocation2 + $0x1f8] sm:$0xff] %v1651_v41  ;;  %v1495_v28 = vpop.f32.mrf.mxu0 }
 0x275   : > { %v1403_v48 = vpop.f32.mrf.mxu3  ;;  %v1652_v33 = vadd.f32 %v1315_v6, %v446_v3  ;;  %v1584_v54 = vpop.f32.mrf.mxu1 }
 0x276   : > { %v1493_v27 = vadd.f32 %v1492_v61, %v1403_v48  ;;  %v455_v61 = vld [vmem:[#allocation2 + $0xd0] sm:$0xff] }
 0x277   : > { %1716 = vst [vmem:[#allocation2 + $0x20] sm:$0xff] %v1652_v33 }
 0x278   : > { %v1582_v26 = vadd.f32 %v1581_v50, %v1493_v27  ;;  %v456_v50 = vld [vmem:[#allocation2 + $0xb8] sm:$0xff]  ;;  %v457_v27 = vld [vmem:[#allocation2 + $0x88] sm:$0xff] }
 0x27a   : > { %v1653_v20 = vadd.f32 %v1582_v26, %v447_v2  ;;  %v1317_v18 = vpop.f32.mrf.mxu2  ;;  %v458_v2 = vld [vmem:[#allocation2 + $0xa8] sm:$0xff] }
 0x27b   : > { %v1318_v38 = vadd.f32 %v1317_v18, %v4014_v23 }
 0x27c   : > { %1717 = vst [vmem:[#allocation2 + $0x128] sm:$0xff] %v1653_v20  ;;  %v1497_v42 = vpop.f32.mrf.mxu0 }
 0x27d   : > { %v1406_v55 = vpop.f32.mrf.mxu3  ;;  %v1654_v49 = vadd.f32 %v1318_v38, %v448_v44  ;;  %v1586_v15 = vpop.f32.mrf.mxu1 }
 0x27e   : > { %v1496_v45 = vadd.f32 %v1495_v28, %v1406_v55  ;;  %v459_v55 = vld [vmem:[#allocation2 + $0x1c8] sm:$0xff] }
 0x27f   : > { %1718 = vst [vmem:[#allocation2 + $0x1a0] sm:$0xff] %v1654_v49  ;;  %v460_v49 = vld [vmem:[#allocation2 + $0x170] sm:$0xff] }
 0x280   : > { %v1585_v46 = vadd.f32 %v1584_v54, %v1496_v45 }
 0x282   : > { %v1655_v16 = vadd.f32 %v1585_v46, %v449_v12  ;;  %v1319_v10 = vpop.f32.mrf.mxu2 }
 0x283   : > { %v1320_v5 = vadd.f32 %v1319_v10, %v4020_v47 }
 0x284   : > { %1719 = vst [vmem:[#allocation2 + $0x1f0] sm:$0xff] %v1655_v16  ;;  %v1500_v51 = vpop.f32.mrf.mxu0 }
 0x285   : > { %v1408_v11 = vpop.f32.mrf.mxu3  ;;  %v1656_v60 = vadd.f32 %v1320_v5, %v450_v29  ;;  %v1589_v23 = vpop.f32.mrf.mxu1  ;;  %v461_v5 = vld [vmem:[#allocation2 + $0x178] sm:$0xff] }
 0x286   : > { %v1498_v59 = vadd.f32 %v1497_v42, %v1408_v11 }
 0x287   : > { %1720 = vst [vmem:[#allocation2 + $0xe8] sm:$0xff] %v1656_v60 }
 0x288   : > { %v1587_v25 = vadd.f32 %v1586_v15, %v1498_v59 }
 0x28a   : > { %v1657_v52 = vadd.f32 %v1587_v25, %v451_v35  ;;  %v1322_v34 = vpop.f32.mrf.mxu2 }
 0x28b   : > { %v1323_v9 = vadd.f32 %v1322_v34, %v4026_v4 }
 0x28c   : > { %1721 = vst [vmem:[#allocation2 + $0x78] sm:$0xff] %v1657_v52  ;;  %v1502_v63 = vpop.f32.mrf.mxu0 }
 0x28d   : > { %v1411_v17 = vpop.f32.mrf.mxu3  ;;  %v1658_v7 = vadd.f32 %v1323_v9, %v452_v58  ;;  %v1591_v47 = vpop.f32.mrf.mxu1  ;;  %v463_v58 = vld [vmem:[#allocation2 + $0x190] sm:$0xff] }
 0x28e   : > { %v1501_v0 = vadd.f32 %v1500_v51, %v1411_v17  ;;  %v462_v51 = vld [vmem:[#allocation2 + $0x68] sm:$0xff] }
 0x28f   : > { %1722 = vst [vmem:[#allocation2 + $0x70] sm:$0xff] %v1658_v7 }
 0x290   : > { %v1590_v43 = vadd.f32 %v1589_v23, %v1501_v0  ;;  %v464_v0 = vld [vmem:[#allocation2 + $0x198] sm:$0xff] }
 0x292   : > { %v1659_v37 = vadd.f32 %v1590_v43, %v453_v62  ;;  %v1324_v40 = vpop.f32.mrf.mxu2 }
 0x293   : > { %v1325_v57 = vadd.f32 %v1324_v40, %v4032_v14 }
 0x294   : > { %1723 = vst [vmem:[#allocation2 + $0x90] sm:$0xff] %v1659_v37  ;;  %v1505_v56 = vpop.f32.mrf.mxu0  ;;  %v465_v37 = vld [vmem:[#allocation2 + $0x38] sm:$0xff] }
 0x295   : > { %v1413_v32 = vpop.f32.mrf.mxu3  ;;  %v1660_v36 = vadd.f32 %v1325_v57, %v454_v19  ;;  %v1594_v4 = vpop.f32.mrf.mxu1 }
 0x296   : > { %v1503_v24 = vadd.f32 %v1502_v63, %v1413_v32  ;;  %v466_v32 = vld [vmem:[#allocation2 + $0xc0] sm:$0xff] }
 0x297   : > { %1724 = vst [vmem:[#allocation2 + $0x1d8] sm:$0xff] %v1660_v36 }
 0x298   : > { %v1592_v30 = vadd.f32 %v1591_v47, %v1503_v24 }
 0x29a   : > { %v1661_v13 = vadd.f32 %v1592_v30, %v455_v61  ;;  %v1327_v31 = vpop.f32.mrf.mxu2 }
 0x29b   : > { %v1328_v41 = vadd.f32 %v1327_v31, %v4038_v22 }
 0x29c   : > { %1725 = vst [vmem:[#allocation2 + $0xd0] sm:$0xff] %v1661_v13  ;;  %v1507_v6 = vpop.f32.mrf.mxu0  ;;  %v467_v13 = vld [vmem:[#allocation2 + $0x1c0] sm:$0xff] }
 0x29d   : > { %v1416_v3 = vpop.f32.mrf.mxu3  ;;  %v1662_v48 = vadd.f32 %v1328_v41, %v456_v50  ;;  %v1596_v14 = vpop.f32.mrf.mxu1  ;;  %v468_v41 = vld [vmem:[#allocation2 + $0x158] sm:$0xff] }
 0x29e   : > { %v1506_v8 = vadd.f32 %v1505_v56, %v1416_v3  ;;  %v4467_v56 = vld [vmem:[#allocation28_spill] sm:$0xff] }
 0x29f   : > { %1726 = vst [vmem:[#allocation2 + $0xb8] sm:$0xff] %v1662_v48 }
 0x2a0   : > { %v1595_v28 = vadd.f32 %v1594_v4, %v1506_v8 }
 0x2a2   : > { %v1663_v33 = vadd.f32 %v1595_v28, %v457_v27  ;;  %v1329_v54 = vpop.f32.mrf.mxu2 }
 0x2a3   : > { %v1330_v26 = vadd.f32 %v1329_v54, %v4044_v1 }
 0x2a4   : > { %1727 = vst [vmem:[#allocation2 + $0x88] sm:$0xff] %v1663_v33  ;;  %v1510_v18 = vpop.f32.mrf.mxu0  ;;  %v469_v33 = vld [vmem:[#allocation2 + $0x10] sm:$0xff] }
 0x2a5   : > { %v1418_v20 = vpop.f32.mrf.mxu3  ;;  %v1664_v38 = vadd.f32 %v1330_v26, %v458_v2  ;;  %v1599_v22 = vpop.f32.mrf.mxu1  ;;  %v470_v26 = vld [vmem:[#allocation2 + $0x58] sm:$0xff] }
 0x2a6   : > { %v1508_v44 = vadd.f32 %v1507_v6, %v1418_v20  ;;  %v4468_v6 = vld [vmem:[#allocation29_spill] sm:$0xff] }
 0x2a7   : > { %1728 = vst [vmem:[#allocation2 + $0xa8] sm:$0xff] %v1664_v38 }
 0x2a8   : > { %v1597_v45 = vadd.f32 %v1596_v14, %v1508_v44 }
 0x2aa   : > { %v1665_v42 = vadd.f32 %v1597_v45, %v459_v55  ;;  %v1332_v12 = vpop.f32.mrf.mxu2 }
 0x2ab   : > { %v1333_v15 = vadd.f32 %v1332_v12, %v4050_v53 }
 0x2ac   : > { %1729 = vst [vmem:[#allocation2 + $0x1c8] sm:$0xff] %v1665_v42  ;;  %v1512_v29 = vpop.f32.mrf.mxu0 }
 0x2ad   : > { %v1421_v46 = vpop.f32.mrf.mxu3  ;;  %v1666_v10 = vadd.f32 %v1333_v15, %v460_v49  ;;  %v1601_v1 = vpop.f32.mrf.mxu1  ;;  %v471_v49 = vld [vmem:[#allocation2 + $0xa0] sm:$0xff] }
 0x2ae   : > { %v1511_v16 = vadd.f32 %v1510_v18, %v1421_v46  ;;  %v4469_v18 = vld [vmem:[#allocation30_spill] sm:$0xff] }
 0x2af   : > { %1730 = vst [vmem:[#allocation2 + $0x170] sm:$0xff] %v1666_v10 }
 0x2b0   : > { %v1600_v11 = vadd.f32 %v1599_v22, %v1511_v16 }
 0x2b2   : > { %v1667_v59 = vadd.f32 %v1600_v11, %v461_v5  ;;  %v1334_v60 = vpop.f32.mrf.mxu2 }
 0x2b3   : > { %v1335_v35 = vadd.f32 %v1334_v60, %v4056_v21 }
 0x2b4   : > { %1731 = vst [vmem:[#allocation2 + $0x178] sm:$0xff] %v1667_v59  ;;  %v1515_v34 = vpop.f32.mrf.mxu0 }
 0x2b5   : > { %v1423_v23 = vpop.f32.mrf.mxu3  ;;  %v1668_v52 = vadd.f32 %v1335_v35, %v462_v51  ;;  %v1604_v9 = vpop.f32.mrf.mxu1 }
 0x2b6   : > { %v1513_v25 = vadd.f32 %v1512_v29, %v1423_v23 }
 0x2b7   : > { %1732 = vst [vmem:[#allocation2 + $0x68] sm:$0xff] %v1668_v52 }
 0x2b8   : > { %v1602_v53 = vadd.f32 %v1601_v1, %v1513_v25 }
 0x2ba   : > { %v1669_v17 = vadd.f32 %v1602_v53, %v463_v58  ;;  %v1337_v63 = vpop.f32.mrf.mxu2 }
 0x2bb   : > { %v1338_v7 = vadd.f32 %v1337_v63, %v4062_v39 }
 0x2bc   : > { %1733 = vst [vmem:[#allocation2 + $0x190] sm:$0xff] %v1669_v17  ;;  %v1517_v21 = vpop.f32.mrf.mxu0 }
 0x2bd   : > { %v1426_v62 = vpop.f32.mrf.mxu3  ;;  %v1670_v43 = vadd.f32 %v1338_v7, %v464_v0  ;;  %v1606_v57 = vpop.f32.mrf.mxu1 }
 0x2be   : > { %v1516_v47 = vadd.f32 %v1515_v34, %v1426_v62 }
 0x2bf   : > { %1734 = vst [vmem:[#allocation2 + $0x198] sm:$0xff] %v1670_v43 }
 0x2c0   : > { %v1605_v19 = vadd.f32 %v1604_v9, %v1516_v47 }
 0x2c2   : > { %v1671_v40 = vadd.f32 %v1605_v19, %v465_v37  ;;  %v1339_v24 = vpop.f32.mrf.mxu2 }
 0x2c3   : > { %v1340_v36 = vadd.f32 %v1339_v24, %v4467_v56 }
 0x2c4   : > { %1735 = vst [vmem:[#allocation2 + $0x38] sm:$0xff] %v1671_v40  ;;  %v1520_v31 = vpop.f32.mrf.mxu0 }
 0x2c5   : > { %v1428_v61 = vpop.f32.mrf.mxu3  ;;  %v1672_v30 = vadd.f32 %v1340_v36, %v466_v32  ;;  %v1609_v8 = vpop.f32.mrf.mxu1 }
 0x2c6   : > { %v1518_v4 = vadd.f32 %v1517_v21, %v1428_v61 }
 0x2c7   : > { %1736 = vst [vmem:[#allocation2 + $0xc0] sm:$0xff] %v1672_v30 }
 0x2c8   : > { %v1607_v50 = vadd.f32 %v1606_v57, %v1518_v4 }
 0x2ca   : > { %v1673_v39 = vadd.f32 %v1607_v50, %v467_v13  ;;  %v1342_v3 = vpop.f32.mrf.mxu2 }
 0x2cb   : > { %v1343_v48 = vadd.f32 %v1342_v3, %v4468_v6 }
 0x2cc   : > { %1737 = vst [vmem:[#allocation2 + $0x1c0] sm:$0xff] %v1673_v39  ;;  %v1522_v44 = vpop.f32.mrf.mxu0 }
 0x2cd   : > { %v1431_v27 = vpop.f32.mrf.mxu3  ;;  %v1674_v28 = vadd.f32 %v1343_v48, %v468_v41  ;;  %v1611_v45 = vpop.f32.mrf.mxu1 }
 0x2ce   : > { %v1521_v14 = vadd.f32 %v1520_v31, %v1431_v27 }
 0x2cf   : > { %1738 = vst [vmem:[#allocation2 + $0x158] sm:$0xff] %v1674_v28 }
 0x2d0   : > { %v1610_v2 = vadd.f32 %v1609_v8, %v1521_v14 }
 0x2d2   : > { %v1675_v54 = vadd.f32 %v1610_v2, %v469_v33  ;;  %v1344_v20 = vpop.f32.mrf.mxu2 }
 0x2d3   : > { %v1345_v38 = vadd.f32 %v1344_v20, %v4469_v18 }
 0x2d4   : > { %1739 = vst [vmem:[#allocation2 + $0x10] sm:$0xff] %v1675_v54 }
 0x2d5   : > { %v1433_v55 = vpop.f32.mrf.mxu3  ;;  %v1676_v42 = vadd.f32 %v1345_v38, %v470_v26 }
 0x2d6   : > { %v1523_v22 = vadd.f32 %v1522_v44, %v1433_v55 }
 0x2d7   : > { %1740 = vst [vmem:[#allocation2 + $0x58] sm:$0xff] %v1676_v42 }
 0x2d8   : > { %v1612_v12 = vadd.f32 %v1611_v45, %v1523_v22  ;;  %1745 = sbr.rel (%p2826_p1) target bundleno = 821 (0x335), region = 60 }
 0x2da   : > { %v1677_v15 = vadd.f32 %v1612_v12, %v471_v49 }
 0x2dc   : > { %1741 = vst [vmem:[#allocation2 + $0xa0] sm:$0xff] %v1677_v15 }
 0x2dd   : > { %v1746_v46 = vld [vmem:[#allocation2 + $0xb0] sm:$0xff]  ;;  %v1810_v16 = vld [vmem:[#allocation8] sm:$0x3]  ;;  %v1748_v1 = vld [vmem:[#allocation2 + $0xd8] sm:$0xff] }
 0x2de   : > { %v4145_v29 = vperm.slane %v1810_v16, 0  ;;  %v1747_v10 = vld [vmem:[#allocation2 + $0x1b0] sm:$0xff]  ;;  %v4147_v5 = vperm.slane %v1810_v16, 1  ;;  %v1749_v11 = vld [vmem:[#allocation2 + $0x18] sm:$0xff]  ;;  %v2072_v51 = vld [vmem:[%s3655_s6] sm:$0xff] }
 0x2df   : > { %v1750_v25 = vld [vmem:[#allocation2 + $0x50] sm:$0xff]  ;;  %v1751_v52 = vld [vmem:[#allocation2 + $0x168] sm:$0xff]  ;;  %v2075_v53 = vld [vmem:[%s3655_s6 + $0x18] sm:$0xff] }
 0x2e0   : > { %v1816_v59 = vadd.f32 %v4145_v29, %v1746_v46  ;;  %v1817_v60 = vadd.f32 %v4147_v5, %v1747_v10  ;;  %v1818_v35 = vadd.f32 %v4145_v29, %v1748_v1  ;;  %v1819_v23 = vadd.f32 %v4147_v5, %v1749_v11  ;;  %v2073_v58 = vld [vmem:[%s3655_s6 + $0x8] sm:$0xff]  ;;  %v2074_v34 = vld [vmem:[%s3655_s6 + $0x10] sm:$0xff]  ;;  %v2076_v19 = vld [vmem:[%s3655_s6 + $0x20] sm:$0xff] }
 0x2e1   : > { %v1820_v9 = vadd.f32 %v4145_v29, %v1750_v25  ;;  %v1821_v17 = vadd.f32 %v4147_v5, %v1751_v52  ;;  %v1752_v21 = vld [vmem:[#allocation2 + $0x130] sm:$0xff]  ;;  %v1753_v40 = vld [vmem:[#allocation2 + $0x48] sm:$0xff]  ;;  %v1754_v36 = vld [vmem:[#allocation2 + $0x180] sm:$0xff] }
 0x2e2   : > { %vm1880_vm0 = vcmp.gt.f32.partialorder %v1816_v59, 0.0  ;;  %v1944_v0 = vmul.f32 0.1, %v1816_v59  ;;  %vm1881_vm1 = vcmp.gt.f32.partialorder %v1817_v60, 0.0  ;;  %v1945_v63 = vmul.f32 0.1, %v1817_v60 }
 0x2e3   : > { %vm1882_vm2 = vcmp.gt.f32.partialorder %v1818_v35, 0.0  ;;  %v1946_v7 = vmul.f32 0.1, %v1818_v35  ;;  %vm1883_vm3 = vcmp.gt.f32.partialorder %v1819_v23, 0.0  ;;  %v1947_v62 = vmul.f32 0.1, %v1819_v23 }
 0x2e4   : > { %v2008_v47 = vsel %vm1880_vm0, %v1816_v59, %v1944_v0  ;;  %v2009_v43 = vsel %vm1881_vm1, %v1817_v60, %v1945_v63  ;;  %vm1884_vm4 = vcmp.gt.f32.partialorder %v1820_v9, 0.0  ;;  %v1948_v37 = vmul.f32 0.1, %v1820_v9  ;;  %v1755_v61 = vld [vmem:[#allocation2 + $0x110] sm:$0xff]  ;;  %v1756_v50 = vld [vmem:[#allocation2 + $0x118] sm:$0xff]  ;;  %v2080_v28 = vld [vmem:[%s3655_s6 + $0x40] sm:$0xff] }
 0x2e5   : > { %v2136_v57 = vadd.f32 %v2072_v51, %v2008_v47  ;;  %v2137_v32 = vadd.f32 %v2073_v58, %v2009_v43  ;;  %v2010_v24 = vsel %vm1882_vm2, %v1818_v35, %v1946_v7  ;;  %v2011_v56 = vsel %vm1883_vm3, %v1819_v23, %v1947_v62  ;;  %v1757_v39 = vld [vmem:[#allocation2 + $0x98] sm:$0xff]  ;;  %v2077_v3 = vld [vmem:[%s3655_s6 + $0x28] sm:$0xff]  ;;  %v1758_v49 = vld [vmem:[#allocation2 + $0x120] sm:$0xff] }
 0x2e6   : > { %v2138_v4 = vadd.f32 %v2074_v34, %v2010_v24  ;;  %v2139_v30 = vadd.f32 %v2075_v53, %v2011_v56  ;;  %v2012_v13 = vsel %vm1884_vm4, %v1820_v9, %v1948_v37  ;;  %vm1885_vm5 = vcmp.gt.f32.partialorder %v1821_v17, 0.0  ;;  %v2078_v48 = vld [vmem:[%s3655_s6 + $0x30] sm:$0xff]  ;;  %v2079_v27 = vld [vmem:[%s3655_s6 + $0x38] sm:$0xff]  ;;  %v2081_v44 = vld [vmem:[%s3655_s6 + $0x48] sm:$0xff] }
 0x2e7   : > { %2200 = vst [vmem:[%s3661_s10] sm:$0xff] %v2136_v57  ;;  %v2140_v31 = vadd.f32 %v2076_v19, %v2012_v13  ;;  %v1949_v41 = vmul.f32 0.1, %v1821_v17  ;;  %v1822_v8 = vadd.f32 %v4145_v29, %v1752_v21  ;;  %v1823_v6 = vadd.f32 %v4147_v5, %v1753_v40  ;;  %v2082_v22 = vld [vmem:[%s3655_s6 + $0x50] sm:$0xff]  ;;  %v1760_v1 = vld [vmem:[#allocation2 + $0x108] sm:$0xff]  ;;  %v1761_v11 = vld [vmem:[#allocation2 + $0x60] sm:$0xff] }
 0x2e8   : > { %2201 = vst [vmem:[%s3661_s10 + $0x8] sm:$0xff] %v2137_v32  ;;  %v1824_v14 = vadd.f32 %v4145_v29, %v1754_v36  ;;  %v1825_v33 = vadd.f32 %v4147_v5, %v1755_v61  ;;  %v1826_v2 = vadd.f32 %v4145_v29, %v1756_v50  ;;  %v1827_v54 = vadd.f32 %v4147_v5, %v1757_v39  ;;  %v1759_v10 = vld [vmem:[#allocation2 + $0x150] sm:$0xff]  ;;  %v1762_v35 = vld [vmem:[#allocation2 + $0xe0] sm:$0xff]  ;;  %v1763_v21 = vld [vmem:[#allocation2 + $0x188] sm:$0xff] }
 0x2e9   : > { %2202 = vst [vmem:[%s3661_s10 + $0x10] sm:$0xff] %v2138_v4  ;;  %v2013_v26 = vsel %vm1885_vm5, %v1821_v17, %v1949_v41  ;;  %vm1886_vm6 = vcmp.gt.f32.partialorder %v1822_v8, 0.0  ;;  %v1950_v20 = vmul.f32 0.1, %v1822_v8  ;;  %vm1887_vm7 = vcmp.gt.f32.partialorder %v1823_v6, 0.0  ;;  %v2083_v58 = vld [vmem:[%s3655_s6 + $0x58] sm:$0xff] }
 0x2ea   : > { %2203 = vst [vmem:[%s3661_s10 + $0x18] sm:$0xff] %v2139_v30  ;;  %v2141_v18 = vadd.f32 %v2077_v3, %v2013_v26  ;;  %v1951_v38 = vmul.f32 0.1, %v1823_v6  ;;  %vm1888_vm8 = vcmp.gt.f32.partialorder %v1824_v14, 0.0  ;;  %v1952_v55 = vmul.f32 0.1, %v1824_v14 }
 0x2eb   : > { %2204 = vst [vmem:[%s3661_s10 + $0x20] sm:$0xff] %v2140_v31  ;;  %v2014_v45 = vsel %vm1886_vm6, %v1822_v8, %v1950_v20  ;;  %vm1889_vm9 = vcmp.gt.f32.partialorder %v1825_v33, 0.0  ;;  %v1953_v42 = vmul.f32 0.1, %v1825_v33  ;;  %vm1890_vm10 = vcmp.gt.f32.partialorder %v1826_v2, 0.0  ;;  %v2084_v9 = vld [vmem:[%s3655_s6 + $0x60] sm:$0xff] }
 0x2ec   : > { %2205 = vst [vmem:[%s3661_s10 + $0x28] sm:$0xff] %v2141_v18  ;;  %v2142_v12 = vadd.f32 %v2078_v48, %v2014_v45  ;;  %v2015_v15 = vsel %vm1887_vm7, %v1823_v6, %v1951_v38  ;;  %v2016_v46 = vsel %vm1888_vm8, %v1824_v14, %v1952_v55  ;;  %v1954_v16 = vmul.f32 0.1, %v1826_v2  ;;  %v2085_v0 = vld [vmem:[%s3655_s6 + $0x68] sm:$0xff]  ;;  %v2086_v43 = vld [vmem:[%s3655_s6 + $0x70] sm:$0xff]  ;;  %v2087_v37 = vld [vmem:[%s3655_s6 + $0x78] sm:$0xff] }
 0x2ed   : > { %v2143_v59 = vadd.f32 %v2079_v27, %v2015_v15  ;;  %v2144_v51 = vadd.f32 %v2080_v28, %v2016_v46  ;;  %v2017_v60 = vsel %vm1889_vm9, %v1825_v33, %v1953_v42  ;;  %vm1891_vm11 = vcmp.gt.f32.partialorder %v1827_v54, 0.0  ;;  %v1764_v32 = vld [vmem:[#allocation2 + $0x138] sm:$0xff]  ;;  %v2088_v13 = vld [vmem:[%s3655_s6 + $0x80] sm:$0xff]  ;;  %v2089_v26 = vld [vmem:[%s3655_s6 + $0x88] sm:$0xff] }
 0x2ee   : > { %2206 = vst [vmem:[%s3661_s10 + $0x30] sm:$0xff] %v2142_v12  ;;  %v2145_v23 = vadd.f32 %v2081_v44, %v2017_v60  ;;  %v2018_v25 = vsel %vm1890_vm10, %v1826_v2, %v1954_v16  ;;  %v1955_v52 = vmul.f32 0.1, %v1827_v54  ;;  %v1828_v34 = vadd.f32 %v4145_v29, %v1758_v49  ;;  %v1765_v50 = vld [vmem:[#allocation2 + $0x140] sm:$0xff]  ;;  %v1767_v6 = vld [vmem:[#allocation2 + $0x1a8] sm:$0xff]  ;;  %v1768_v33 = vld [vmem:[#allocation2 + $0x1b8] sm:$0xff] }
 0x2ef   : > { %2207 = vst [vmem:[%s3661_s10 + $0x38] sm:$0xff] %v2143_v59  ;;  %v2146_v53 = vadd.f32 %v2082_v22, %v2018_v25  ;;  %v1829_v17 = vadd.f32 %v4147_v5, %v1759_v10  ;;  %v1830_v63 = vadd.f32 %v4145_v29, %v1760_v1  ;;  %v1831_v7 = vadd.f32 %v4147_v5, %v1761_v11  ;;  %v1766_v8 = vld [vmem:[#allocation2 + $0x80] sm:$0xff]  ;;  %v2090_v18 = vld [vmem:[%s3655_s6 + $0x90] sm:$0xff]  ;;  %v1769_v10 = vld [vmem:[#allocation2 + $0x28] sm:$0xff] }
 0x2f0   : > { %2208 = vst [vmem:[%s3661_s10 + $0x40] sm:$0xff] %v2144_v51  ;;  %v2019_v62 = vsel %vm1891_vm11, %v1827_v54, %v1955_v52  ;;  %vm1892_vm12 = vcmp.gt.f32.partialorder %v1828_v34, 0.0  ;;  %v1956_v47 = vmul.f32 0.1, %v1828_v34  ;;  %v1832_v19 = vadd.f32 %v4145_v29, %v1762_v35  ;;  %v2091_v42 = vld [vmem:[%s3655_s6 + $0x98] sm:$0xff]  ;;  %v2092_v49 = vld [vmem:[%s3655_s6 + $0xa0] sm:$0xff] }
 0x2f1   : > { %2209 = vst [vmem:[%s3661_s10 + $0x48] sm:$0xff] %v2145_v23  ;;  %v2147_v40 = vadd.f32 %v2083_v58, %v2019_v62  ;;  %vm1893_vm13 = vcmp.gt.f32.partialorder %v1829_v17, 0.0  ;;  %v1957_v57 = vmul.f32 0.1, %v1829_v17  ;;  %vm1894_vm14 = vcmp.gt.f32.partialorder %v1830_v63, 0.0  ;;  %v1770_v1 = vld [vmem:[#allocation2 + $0x1e8] sm:$0xff] }
 0x2f2   : > { %2210 = vst [vmem:[%s3661_s10 + $0x50] sm:$0xff] %v2146_v53  ;;  %v2020_v24 = vsel %vm1892_vm12, %v1828_v34, %v1956_v47  ;;  %v1958_v56 = vmul.f32 0.1, %v1830_v63  ;;  %vm1895_vm15 = vcmp.gt.f32.partialorder %v1831_v7, 0.0  ;;  %v1959_v36 = vmul.f32 0.1, %v1831_v7 }
 0x2f3   : > { %2211 = vst [vmem:[%s3661_s10 + $0x58] sm:$0xff] %v2147_v40  ;;  %v2148_v61 = vadd.f32 %v2084_v9, %v2020_v24  ;;  %v2021_v4 = vsel %vm1893_vm13, %v1829_v17, %v1957_v57  ;;  %vm1896_vm0 = vcmp.gt.f32.partialorder %v1832_v19, 0.0  ;;  %v1960_v30 = vmul.f32 0.1, %v1832_v19  ;;  %v2093_v60 = vld [vmem:[%s3655_s6 + $0xa8] sm:$0xff]  ;;  %v1771_v35 = vld [vmem:[#allocation2 + $0xf8] sm:$0xff] }
 0x2f4   : > { %v2149_v39 = vadd.f32 %v2085_v0, %v2021_v4  ;;  %v2022_v31 = vsel %vm1894_vm14, %v1830_v63, %v1958_v56  ;;  %v2023_v41 = vsel %vm1895_vm15, %v1831_v7, %v1959_v36  ;;  %v1833_v3 = vadd.f32 %v4147_v5, %v1763_v21  ;;  %v1772_v23 = vld [vmem:[#allocation2 + $0x160] sm:$0xff]  ;;  %v2094_v34 = vld [vmem:[%s3655_s6 + $0xb0] sm:$0xff] }
 0x2f5   : > { %2212 = vst [vmem:[%s3661_s10 + $0x60] sm:$0xff] %v2148_v61  ;;  %v2150_v48 = vadd.f32 %v2086_v43, %v2022_v31  ;;  %v2151_v27 = vadd.f32 %v2087_v37, %v2023_v41  ;;  %v2024_v14 = vsel %vm1896_vm0, %v1832_v19, %v1960_v30  ;;  %v1834_v28 = vadd.f32 %v4145_v29, %v1764_v32  ;;  %v1773_v63 = vld [vmem:[#allocation2 + $0x30] sm:$0xff]  ;;  %v2095_v47 = vld [vmem:[%s3655_s6 + $0xb8] sm:$0xff]  ;;  %v2096_v43 = vld [vmem:[%s3655_s6 + $0xc0] sm:$0xff] }
 0x2f6   : > { %2213 = vst [vmem:[%s3661_s10 + $0x68] sm:$0xff] %v2149_v39  ;;  %v2152_v2 = vadd.f32 %v2088_v13, %v2024_v14  ;;  %vm1897_vm1 = vcmp.gt.f32.partialorder %v1833_v3, 0.0  ;;  %v1961_v54 = vmul.f32 0.1, %v1833_v3  ;;  %v1835_v20 = vadd.f32 %v4147_v5, %v1765_v50  ;;  %v1774_v21 = vld [vmem:[#allocation2 + $0x1e0] sm:$0xff]  ;;  %v2097_v32 = vld [vmem:[%s3655_s6 + $0xc8] sm:$0xff] }
 0x2f7   : > { %2214 = vst [vmem:[%s3661_s10 + $0x70] sm:$0xff] %v2150_v48  ;;  %vm1898_vm2 = vcmp.gt.f32.partialorder %v1834_v28, 0.0  ;;  %v1962_v44 = vmul.f32 0.1, %v1834_v28  ;;  %v1836_v38 = vadd.f32 %v4145_v29, %v1766_v8  ;;  %v1837_v55 = vadd.f32 %v4147_v5, %v1767_v6  ;;  %v2098_v30 = vld [vmem:[%s3655_s6 + $0xd0] sm:$0xff]  ;;  %v1775_v50 = vld [vmem:[#allocation2] sm:$0xff] }
 0x2f8   : > { %2215 = vst [vmem:[%s3661_s10 + $0x78] sm:$0xff] %v2151_v27  ;;  %v2025_v22 = vsel %vm1897_vm1, %v1833_v3, %v1961_v54  ;;  %vm1899_vm3 = vcmp.gt.f32.partialorder %v1835_v20, 0.0  ;;  %v1963_v45 = vmul.f32 0.1, %v1835_v20  ;;  %v1838_v12 = vadd.f32 %v4145_v29, %v1768_v33  ;;  %v1776_v3 = vld [vmem:[#allocation2 + $0xf0] sm:$0xff]  ;;  %v1777_v8 = vld [vmem:[#allocation2 + $0x8] sm:$0xff] }
 0x2f9   : > { %2216 = vst [vmem:[%s3661_s10 + $0x80] sm:$0xff] %v2152_v2  ;;  %v2153_v15 = vadd.f32 %v2089_v26, %v2025_v22  ;;  %v2026_v46 = vsel %vm1898_vm2, %v1834_v28, %v1962_v44  ;;  %vm1900_vm4 = vcmp.gt.f32.partialorder %v1836_v38, 0.0  ;;  %v1964_v16 = vmul.f32 0.1, %v1836_v38  ;;  %v1778_v6 = vld [vmem:[#allocation2 + $0x148] sm:$0xff]  ;;  %v2099_v33 = vld [vmem:[%s3655_s6 + $0xd8] sm:$0xff] }
 0x2fa   : > { %v2154_v11 = vadd.f32 %v2090_v18, %v2026_v46  ;;  %v2027_v59 = vsel %vm1899_vm3, %v1835_v20, %v1963_v45  ;;  %vm1901_vm5 = vcmp.gt.f32.partialorder %v1837_v55, 0.0  ;;  %v1965_v51 = vmul.f32 0.1, %v1837_v55  ;;  %v2100_v26 = vld [vmem:[%s3655_s6 + $0xe0] sm:$0xff]  ;;  %v2101_v18 = vld [vmem:[%s3655_s6 + $0xe8] sm:$0xff] }
 0x2fb   : > { %2217 = vst [vmem:[%s3661_s10 + $0x88] sm:$0xff] %v2153_v15  ;;  %v2155_v25 = vadd.f32 %v2091_v42, %v2027_v59  ;;  %v2028_v52 = vsel %vm1900_vm4, %v1836_v38, %v1964_v16  ;;  %vm1902_vm6 = vcmp.gt.f32.partialorder %v1838_v12, 0.0  ;;  %v1966_v58 = vmul.f32 0.1, %v1838_v12  ;;  %v2103_v15 = vld [vmem:[%s3655_s6 + $0xf8] sm:$0xff]  ;;  %v2104_v46 = vld [vmem:[%s3655_s6 + $0x100] sm:$0xff] }
 0x2fc   : > { %2218 = vst [vmem:[%s3661_s10 + $0x90] sm:$0xff] %v2154_v11  ;;  %v2156_v53 = vadd.f32 %v2092_v49, %v2028_v52  ;;  %v2029_v9 = vsel %vm1901_vm5, %v1837_v55, %v1965_v51  ;;  %v1839_v17 = vadd.f32 %v4147_v5, %v1769_v10  ;;  %v1840_v0 = vadd.f32 %v4145_v29, %v1770_v1  ;;  %v2102_v55 = vld [vmem:[%s3655_s6 + $0xf0] sm:$0xff]  ;;  %v1780_v10 = vld [vmem:[#allocation2 + $0x100] sm:$0xff]  ;;  %v1781_v59 = vld [vmem:[#allocation2 + $0xc8] sm:$0xff] }
 0x2fd   : > { %2219 = vst [vmem:[%s3661_s10 + $0x98] sm:$0xff] %v2155_v25  ;;  %v2157_v7 = vadd.f32 %v2093_v60, %v2029_v9  ;;  %v2030_v62 = vsel %vm1902_vm6, %v1838_v12, %v1966_v58  ;;  %v1841_v37 = vadd.f32 %v4147_v5, %v1771_v35  ;;  %v1842_v19 = vadd.f32 %v4145_v29, %v1772_v23  ;;  %v1779_v16 = vld [vmem:[#allocation2 + $0x1d0] sm:$0xff] }
 0x2fe   : > { %2220 = vst [vmem:[%s3661_s10 + $0xa0] sm:$0xff] %v2156_v53  ;;  %v2158_v40 = vadd.f32 %v2094_v34, %v2030_v62  ;;  %vm1903_vm7 = vcmp.gt.f32.partialorder %v1839_v17, 0.0  ;;  %v1967_v57 = vmul.f32 0.1, %v1839_v17  ;;  %vm1904_vm8 = vcmp.gt.f32.partialorder %v1840_v0, 0.0  ;;  %v1782_v34 = vld [vmem:[#allocation2 + $0x40] sm:$0xff] }
 0x2ff   : > { %2221 = vst [vmem:[%s3661_s10 + $0xa8] sm:$0xff] %v2157_v7  ;;  %v1968_v24 = vmul.f32 0.1, %v1840_v0  ;;  %vm1905_vm9 = vcmp.gt.f32.partialorder %v1841_v37, 0.0  ;;  %v1969_v56 = vmul.f32 0.1, %v1841_v37  ;;  %v1843_v36 = vadd.f32 %v4147_v5, %v1773_v63 }
 0x300   : > { %2222 = vst [vmem:[%s3661_s10 + $0xb0] sm:$0xff] %v2158_v40  ;;  %v2031_v61 = vsel %vm1903_vm7, %v1839_v17, %v1967_v57  ;;  %vm1906_vm10 = vcmp.gt.f32.partialorder %v1842_v19, 0.0  ;;  %v1970_v4 = vmul.f32 0.1, %v1842_v19  ;;  %v1844_v13 = vadd.f32 %v4145_v29, %v1774_v21  ;;  %v1783_v63 = vld [vmem:[#allocation2 + $0x1f8] sm:$0xff]  ;;  %v1784_v7 = vld [vmem:[#allocation2 + $0x20] sm:$0xff] }
 0x301   : > { %v2159_v39 = vadd.f32 %v2095_v47, %v2031_v61  ;;  %v2032_v31 = vsel %vm1904_vm8, %v1840_v0, %v1968_v24  ;;  %v2033_v41 = vsel %vm1905_vm9, %v1841_v37, %v1969_v56  ;;  %vm1907_vm11 = vcmp.gt.f32.partialorder %v1843_v36, 0.0  ;;  %v2105_v37 = vld [vmem:[%s3655_s6 + $0x108] sm:$0xff]  ;;  %v2106_v21 = vld [vmem:[%s3655_s6 + $0x110] sm:$0xff]  ;;  %v2107_v24 = vld [vmem:[%s3655_s6 + $0x118] sm:$0xff] }
 0x302   : > { %v2160_v48 = vadd.f32 %v2096_v43, %v2032_v31  ;;  %v2161_v27 = vadd.f32 %v2097_v32, %v2033_v41  ;;  %v2034_v14 = vsel %vm1906_vm10, %v1842_v19, %v1970_v4  ;;  %v1971_v28 = vmul.f32 0.1, %v1843_v36  ;;  %v2108_v56 = vld [vmem:[%s3655_s6 + $0x120] sm:$0xff] }
 0x303   : > { %2223 = vst [vmem:[%s3661_s10 + $0xb8] sm:$0xff] %v2159_v39  ;;  %v2162_v2 = vadd.f32 %v2098_v30, %v2034_v14  ;;  %vm1908_vm12 = vcmp.gt.f32.partialorder %v1844_v13, 0.0  ;;  %v1972_v54 = vmul.f32 0.1, %v1844_v13  ;;  %v1845_v20 = vadd.f32 %v4147_v5, %v1775_v50  ;;  %v1785_v50 = vld [vmem:[#allocation2 + $0x128] sm:$0xff]  ;;  %v1786_v39 = vld [vmem:[#allocation2 + $0x1a0] sm:$0xff] }
 0x304   : > { %2224 = vst [vmem:[%s3661_s10 + $0xc0] sm:$0xff] %v2160_v48  ;;  %v2035_v44 = vsel %vm1907_vm11, %v1843_v36, %v1971_v28  ;;  %v1846_v38 = vadd.f32 %v4145_v29, %v1776_v3  ;;  %v1847_v22 = vadd.f32 %v4147_v5, %v1777_v8  ;;  %v1848_v45 = vadd.f32 %v4145_v29, %v1778_v6  ;;  %v2109_v8 = vld [vmem:[%s3655_s6 + $0x128] sm:$0xff] }
 0x305   : > { %2225 = vst [vmem:[%s3661_s10 + $0xc8] sm:$0xff] %v2161_v27  ;;  %v2163_v42 = vadd.f32 %v2099_v33, %v2035_v44  ;;  %v2036_v49 = vsel %vm1908_vm12, %v1844_v13, %v1972_v54  ;;  %vm1909_vm13 = vcmp.gt.f32.partialorder %v1845_v20, 0.0  ;;  %v1973_v12 = vmul.f32 0.1, %v1845_v20  ;;  %v1787_v6 = vld [vmem:[#allocation2 + $0x1f0] sm:$0xff]  ;;  %v1788_v48 = vld [vmem:[#allocation2 + $0xe8] sm:$0xff] }
 0x306   : > { %2226 = vst [vmem:[%s3661_s10 + $0xd0] sm:$0xff] %v2162_v2  ;;  %v2164_v1 = vadd.f32 %v2100_v26, %v2036_v49  ;;  %vm1910_vm14 = vcmp.gt.f32.partialorder %v1846_v38, 0.0  ;;  %v1974_v11 = vmul.f32 0.1, %v1846_v38  ;;  %vm1911_vm15 = vcmp.gt.f32.partialorder %v1847_v22, 0.0  ;;  %v2110_v33 = vld [vmem:[%s3655_s6 + $0x130] sm:$0xff] }
 0x307   : > { %2227 = vst [vmem:[%s3661_s10 + $0xd8] sm:$0xff] %v2163_v42  ;;  %v2037_v51 = vsel %vm1909_vm13, %v1845_v20, %v1973_v12  ;;  %v1975_v60 = vmul.f32 0.1, %v1847_v22  ;;  %vm1912_vm0 = vcmp.gt.f32.partialorder %v1848_v45, 0.0  ;;  %v1976_v35 = vmul.f32 0.1, %v1848_v45 }
 0x308   : > { %2228 = vst [vmem:[%s3661_s10 + $0xe0] sm:$0xff] %v2164_v1  ;;  %v2165_v23 = vadd.f32 %v2101_v18, %v2037_v51  ;;  %v2038_v25 = vsel %vm1910_vm14, %v1846_v38, %v1974_v11  ;;  %v1849_v52 = vadd.f32 %v4147_v5, %v1779_v16  ;;  %v1850_v58 = vadd.f32 %v4145_v29, %v1780_v10  ;;  %v1789_v44 = vld [vmem:[#allocation2 + $0x78] sm:$0xff]  ;;  %v1790_v49 = vld [vmem:[#allocation2 + $0x70] sm:$0xff] }
 0x309   : > { %v2166_v53 = vadd.f32 %v2102_v55, %v2038_v25  ;;  %v2039_v9 = vsel %vm1911_vm15, %v1847_v22, %v1975_v60  ;;  %v2040_v17 = vsel %vm1912_vm0, %v1848_v45, %v1976_v35  ;;  %v1851_v0 = vadd.f32 %v4147_v5, %v1781_v59  ;;  %v2111_v55 = vld [vmem:[%s3655_s6 + $0x138] sm:$0xff]  ;;  %v2112_v22 = vld [vmem:[%s3655_s6 + $0x140] sm:$0xff]  ;;  %v2114_v51 = vld [vmem:[%s3655_s6 + $0x150] sm:$0xff] }
 0x30a   : > { %2229 = vst [vmem:[%s3661_s10 + $0xe8] sm:$0xff] %v2165_v23  ;;  %v2167_v62 = vadd.f32 %v2103_v15, %v2039_v9  ;;  %v2168_v47 = vadd.f32 %v2104_v46, %v2040_v17  ;;  %vm1913_vm1 = vcmp.gt.f32.partialorder %v1849_v52, 0.0  ;;  %v1977_v43 = vmul.f32 0.1, %v1849_v52  ;;  %v2113_v46 = vld [vmem:[%s3655_s6 + $0x148] sm:$0xff] }
 0x30b   : > { %2230 = vst [vmem:[%s3661_s10 + $0xf0] sm:$0xff] %v2166_v53  ;;  %vm1914_vm2 = vcmp.gt.f32.partialorder %v1850_v58, 0.0  ;;  %v1978_v19 = vmul.f32 0.1, %v1850_v58  ;;  %vm1915_vm3 = vcmp.gt.f32.partialorder %v1851_v0, 0.0  ;;  %v1852_v40 = vadd.f32 %v4145_v29, %v1782_v34  ;;  %v1791_v35 = vld [vmem:[#allocation2 + $0x90] sm:$0xff] }
 0x30c   : > { %2231 = vst [vmem:[%s3661_s10 + $0xf8] sm:$0xff] %v2167_v62  ;;  %v2041_v57 = vsel %vm1913_vm1, %v1849_v52, %v1977_v43  ;;  %v1979_v32 = vmul.f32 0.1, %v1851_v0  ;;  %v1853_v36 = vadd.f32 %v4147_v5, %v1783_v63  ;;  %v1854_v61 = vadd.f32 %v4145_v29, %v1784_v7  ;;  %v1793_v34 = vld [vmem:[#allocation2 + $0xd0] sm:$0xff]  ;;  %v1794_v53 = vld [vmem:[#allocation2 + $0xb8] sm:$0xff]  ;;  %v2116_v43 = vld [vmem:[%s3655_s6 + $0x160] sm:$0xff] }
 0x30d   : > { %2232 = vst [vmem:[%s3661_s10 + $0x100] sm:$0xff] %v2168_v47  ;;  %v2169_v4 = vadd.f32 %v2105_v37, %v2041_v57  ;;  %v2042_v30 = vsel %vm1914_vm2, %v1850_v58, %v1978_v19  ;;  %vm1916_vm4 = vcmp.gt.f32.partialorder %v1852_v40, 0.0  ;;  %v1980_v13 = vmul.f32 0.1, %v1852_v40  ;;  %v1792_v58 = vld [vmem:[#allocation2 + $0x1d8] sm:$0xff] }
 0x30e   : > { %v2170_v31 = vadd.f32 %v2106_v21, %v2042_v30  ;;  %v2043_v41 = vsel %vm1915_vm3, %v1851_v0, %v1979_v32  ;;  %vm1917_vm5 = vcmp.gt.f32.partialorder %v1853_v36, 0.0  ;;  %v1981_v3 = vmul.f32 0.1, %v1853_v36  ;;  %v2115_v7 = vld [vmem:[%s3655_s6 + $0x158] sm:$0xff]  ;;  %v2117_v21 = vld [vmem:[%s3655_s6 + $0x168] sm:$0xff]  ;;  %v2118_v57 = vld [vmem:[%s3655_s6 + $0x170] sm:$0xff] }
 0x30f   : > { %2233 = vst [vmem:[%s3661_s10 + $0x108] sm:$0xff] %v2169_v4  ;;  %v2171_v27 = vadd.f32 %v2107_v24, %v2043_v41  ;;  %v2044_v14 = vsel %vm1916_vm4, %v1852_v40, %v1980_v13  ;;  %vm1918_vm6 = vcmp.gt.f32.partialorder %v1854_v61, 0.0  ;;  %v1982_v28 = vmul.f32 0.1, %v1854_v61  ;;  %v2119_v4 = vld [vmem:[%s3655_s6 + $0x178] sm:$0xff]  ;;  %v2120_v30 = vld [vmem:[%s3655_s6 + $0x180] sm:$0xff] }
 0x310   : > { %2234 = vst [vmem:[%s3661_s10 + $0x110] sm:$0xff] %v2170_v31  ;;  %v2172_v2 = vadd.f32 %v2108_v56, %v2044_v14  ;;  %v2045_v54 = vsel %vm1917_vm5, %v1853_v36, %v1981_v3  ;;  %v1855_v26 = vadd.f32 %v4147_v5, %v1785_v50  ;;  %v1856_v20 = vadd.f32 %v4145_v29, %v1786_v39  ;;  %v1795_v13 = vld [vmem:[#allocation2 + $0x88] sm:$0xff] }
 0x311   : > { %2235 = vst [vmem:[%s3661_s10 + $0x118] sm:$0xff] %v2171_v27  ;;  %v2173_v18 = vadd.f32 %v2109_v8, %v2045_v54  ;;  %v2046_v38 = vsel %vm1918_vm6, %v1854_v61, %v1982_v28  ;;  %v1857_v45 = vadd.f32 %v4147_v5, %v1787_v6  ;;  %v1858_v42 = vadd.f32 %v4145_v29, %v1788_v48  ;;  %v1796_v50 = vld [vmem:[#allocation2 + $0xa8] sm:$0xff] }
 0x312   : > { %2236 = vst [vmem:[%s3661_s10 + $0x120] sm:$0xff] %v2172_v2  ;;  %v2174_v12 = vadd.f32 %v2110_v33, %v2046_v38  ;;  %vm1919_vm7 = vcmp.gt.f32.partialorder %v1855_v26, 0.0  ;;  %v1983_v15 = vmul.f32 0.1, %v1855_v26  ;;  %vm1920_vm8 = vcmp.gt.f32.partialorder %v1856_v20, 0.0  ;;  %v1797_v41 = vld [vmem:[#allocation2 + $0x1c8] sm:$0xff] }
 0x313   : > { %2237 = vst [vmem:[%s3661_s10 + $0x128] sm:$0xff] %v2173_v18  ;;  %v1984_v16 = vmul.f32 0.1, %v1856_v20  ;;  %vm1921_vm9 = vcmp.gt.f32.partialorder %v1857_v45, 0.0  ;;  %v1985_v10 = vmul.f32 0.1, %v1857_v45  ;;  %v1859_v1 = vadd.f32 %v4147_v5, %v1789_v44 }
 0x314   : > { %2238 = vst [vmem:[%s3661_s10 + $0x130] sm:$0xff] %v2174_v12  ;;  %v2047_v11 = vsel %vm1919_vm7, %v1855_v26, %v1983_v15  ;;  %vm1922_vm10 = vcmp.gt.f32.partialorder %v1858_v42, 0.0  ;;  %v1986_v59 = vmul.f32 0.1, %v1858_v42  ;;  %v1860_v60 = vadd.f32 %v4145_v29, %v1790_v49  ;;  %v1798_v33 = vld [vmem:[#allocation2 + $0x170] sm:$0xff]  ;;  %v1799_v44 = vld [vmem:[#allocation2 + $0x178] sm:$0xff] }
 0x315   : > { %v2175_v23 = vadd.f32 %v2111_v55, %v2047_v11  ;;  %v2048_v25 = vsel %vm1920_vm8, %v1856_v20, %v1984_v16  ;;  %v2049_v52 = vsel %vm1921_vm9, %v1857_v45, %v1985_v10  ;;  %vm1923_vm11 = vcmp.gt.f32.partialorder %v1859_v1, 0.0  ;;  %v1800_v18 = vld [vmem:[#allocation2 + $0x68] sm:$0xff]  ;;  %v2122_v49 = vld [vmem:[%s3655_s6 + $0x190] sm:$0xff]  ;;  %v2123_v16 = vld [vmem:[%s3655_s6 + $0x198] sm:$0xff] }
 0x316   : > { %v2176_v9 = vadd.f32 %v2112_v22, %v2048_v25  ;;  %v2177_v17 = vadd.f32 %v2113_v46, %v2049_v52  ;;  %v2050_v0 = vsel %vm1922_vm10, %v1858_v42, %v1986_v59  ;;  %v1987_v63 = vmul.f32 0.1, %v1859_v1  ;;  %v2121_v45 = vld [vmem:[%s3655_s6 + $0x188] sm:$0xff]  ;;  %v2124_v10 = vld [vmem:[%s3655_s6 + $0x1a0] sm:$0xff] }
 0x317   : > { %2239 = vst [vmem:[%s3661_s10 + $0x138] sm:$0xff] %v2175_v23  ;;  %v2178_v62 = vadd.f32 %v2114_v51, %v2050_v0  ;;  %vm1924_vm12 = vcmp.gt.f32.partialorder %v1860_v60, 0.0  ;;  %v1988_v47 = vmul.f32 0.1, %v1860_v60  ;;  %v1861_v37 = vadd.f32 %v4147_v5, %v1791_v35  ;;  %v1801_v35 = vld [vmem:[#allocation2 + $0x190] sm:$0xff]  ;;  %v1802_v23 = vld [vmem:[#allocation2 + $0x198] sm:$0xff] }
 0x318   : > { %2240 = vst [vmem:[%s3661_s10 + $0x140] sm:$0xff] %v2176_v9  ;;  %v2051_v19 = vsel %vm1923_vm11, %v1859_v1, %v1987_v63  ;;  %v1862_v40 = vadd.f32 %v4145_v29, %v1792_v58  ;;  %v1863_v32 = vadd.f32 %v4147_v5, %v1793_v34  ;;  %v1864_v24 = vadd.f32 %v4145_v29, %v1794_v53  ;;  %v2125_v34 = vld [vmem:[%s3655_s6 + $0x1a8] sm:$0xff]  ;;  %v1803_v53 = vld [vmem:[#allocation2 + $0x38] sm:$0xff]  ;;  %v1804_v9 = vld [vmem:[#allocation2 + $0xc0] sm:$0xff] }
 0x319   : > { %2241 = vst [vmem:[%s3661_s10 + $0x148] sm:$0xff] %v2177_v17  ;;  %v2179_v56 = vadd.f32 %v2115_v7, %v2051_v19  ;;  %v2052_v36 = vsel %vm1924_vm12, %v1860_v60, %v1988_v47  ;;  %vm1925_vm13 = vcmp.gt.f32.partialorder %v1861_v37, 0.0  ;;  %v1989_v61 = vmul.f32 0.1, %v1861_v37  ;;  %v2126_v7 = vld [vmem:[%s3655_s6 + $0x1b0] sm:$0xff]  ;;  %v1805_v19 = vld [vmem:[#allocation2 + $0x1c0] sm:$0xff] }
 0x31a   : > { %2242 = vst [vmem:[%s3661_s10 + $0x150] sm:$0xff] %v2178_v62  ;;  %v2180_v39 = vadd.f32 %v2116_v43, %v2052_v36  ;;  %vm1926_vm14 = vcmp.gt.f32.partialorder %v1862_v40, 0.0  ;;  %v1990_v31 = vmul.f32 0.1, %v1862_v40  ;;  %vm1927_vm15 = vcmp.gt.f32.partialorder %v1863_v32, 0.0  ;;  %v1806_v36 = vld [vmem:[#allocation2 + $0x158] sm:$0xff] }
 0x31b   : > { %2243 = vst [vmem:[%s3661_s10 + $0x158] sm:$0xff] %v2179_v56  ;;  %v2053_v3 = vsel %vm1925_vm13, %v1861_v37, %v1989_v61  ;;  %v1991_v8 = vmul.f32 0.1, %v1863_v32  ;;  %vm1928_vm0 = vcmp.gt.f32.partialorder %v1864_v24, 0.0  ;;  %v1992_v6 = vmul.f32 0.1, %v1864_v24 }
 0x31c   : > { %2244 = vst [vmem:[%s3661_s10 + $0x160] sm:$0xff] %v2180_v39  ;;  %v2181_v48 = vadd.f32 %v2117_v21, %v2053_v3  ;;  %v2054_v27 = vsel %vm1926_vm14, %v1862_v40, %v1990_v31  ;;  %v1865_v14 = vadd.f32 %v4147_v5, %v1795_v13  ;;  %v1866_v28 = vadd.f32 %v4145_v29, %v1796_v50  ;;  %v2130_v3 = vld [vmem:[%s3655_s6 + $0x1d0] sm:$0xff] }
 0x31d   : > { %v2182_v2 = vadd.f32 %v2118_v57, %v2054_v27  ;;  %v2055_v54 = vsel %vm1927_vm15, %v1863_v32, %v1991_v8  ;;  %v2056_v26 = vsel %vm1928_vm0, %v1864_v24, %v1992_v6  ;;  %v1867_v20 = vadd.f32 %v4147_v5, %v1797_v41  ;;  %v2127_v57 = vld [vmem:[%s3655_s6 + $0x1b8] sm:$0xff]  ;;  %v2128_v32 = vld [vmem:[%s3655_s6 + $0x1c0] sm:$0xff]  ;;  %v1807_v6 = vld [vmem:[#allocation2 + $0x10] sm:$0xff] }
 0x31e   : > { %2245 = vst [vmem:[%s3661_s10 + $0x168] sm:$0xff] %v2181_v48  ;;  %v2183_v38 = vadd.f32 %v2119_v4, %v2055_v54  ;;  %v2184_v55 = vadd.f32 %v2120_v30, %v2056_v26  ;;  %vm1929_vm1 = vcmp.gt.f32.partialorder %v1865_v14, 0.0  ;;  %v1993_v22 = vmul.f32 0.1, %v1865_v14  ;;  %v2129_v30 = vld [vmem:[%s3655_s6 + $0x1c8] sm:$0xff] }
 0x31f   : > { %2246 = vst [vmem:[%s3661_s10 + $0x170] sm:$0xff] %v2182_v2  ;;  %vm1930_vm2 = vcmp.gt.f32.partialorder %v1866_v28, 0.0  ;;  %v1994_v42 = vmul.f32 0.1, %v1866_v28  ;;  %vm1931_vm3 = vcmp.gt.f32.partialorder %v1867_v20, 0.0  ;;  %v1868_v12 = vadd.f32 %v4145_v29, %v1798_v33  ;;  %v1809_v33 = vld [vmem:[#allocation2 + $0xa0] sm:$0xff] }
 0x320   : > { %2247 = vst [vmem:[%s3661_s10 + $0x178] sm:$0xff] %v2183_v38  ;;  %v2057_v15 = vsel %vm1929_vm1, %v1865_v14, %v1993_v22  ;;  %v1995_v46 = vmul.f32 0.1, %v1867_v20  ;;  %v1869_v1 = vadd.f32 %v4147_v5, %v1799_v44  ;;  %v1870_v11 = vadd.f32 %v4145_v29, %v1800_v18  ;;  %v2131_v44 = vld [vmem:[%s3655_s6 + $0x1d8] sm:$0xff] }
 0x321   : > { %2248 = vst [vmem:[%s3661_s10 + $0x180] sm:$0xff] %v2184_v55  ;;  %v2185_v59 = vadd.f32 %v2121_v45, %v2057_v15  ;;  %v2058_v51 = vsel %vm1930_vm2, %v1866_v28, %v1994_v42  ;;  %vm1932_vm4 = vcmp.gt.f32.partialorder %v1868_v12, 0.0  ;;  %v1996_v60 = vmul.f32 0.1, %v1868_v12  ;;  %v1808_v28 = vld [vmem:[#allocation2 + $0x58] sm:$0xff]  ;;  %v2132_v55 = vld [vmem:[%s3655_s6 + $0x1e0] sm:$0xff] }
 0x322   : > { %v2186_v25 = vadd.f32 %v2122_v49, %v2058_v51  ;;  %v2059_v52 = vsel %vm1931_vm3, %v1867_v20, %v1995_v46  ;;  %vm1933_vm5 = vcmp.gt.f32.partialorder %v1869_v1, 0.0  ;;  %v1997_v58 = vmul.f32 0.1, %v1869_v1 }
 0x323   : > { %2249 = vst [vmem:[%s3661_s10 + $0x188] sm:$0xff] %v2185_v59  ;;  %v2187_v17 = vadd.f32 %v2123_v16, %v2059_v52  ;;  %v2060_v0 = vsel %vm1932_vm4, %v1868_v12, %v1996_v60  ;;  %vm1934_vm6 = vcmp.gt.f32.partialorder %v1870_v11, 0.0  ;;  %v1998_v63 = vmul.f32 0.1, %v1870_v11  ;;  %v2133_v16 = vld [vmem:[%s3655_s6 + $0x1e8] sm:$0xff]  ;;  %v2135_v59 = vld [vmem:[%s3655_s6 + $0x1f8] sm:$0xff] }
 0x324   : > { %2250 = vst [vmem:[%s3661_s10 + $0x190] sm:$0xff] %v2186_v25  ;;  %v2188_v62 = vadd.f32 %v2124_v10, %v2060_v0  ;;  %v2061_v47 = vsel %vm1933_vm5, %v1869_v1, %v1997_v58  ;;  %v1871_v43 = vadd.f32 %v4147_v5, %v1801_v35  ;;  %v1872_v37 = vadd.f32 %v4145_v29, %v1802_v23 }
 0x325   : > { %2251 = vst [vmem:[%s3661_s10 + $0x198] sm:$0xff] %v2187_v17  ;;  %v2189_v21 = vadd.f32 %v2125_v34, %v2061_v47  ;;  %v2062_v40 = vsel %vm1934_vm6, %v1870_v11, %v1998_v63  ;;  %v1873_v24 = vadd.f32 %v4147_v5, %v1803_v53  ;;  %v1874_v56 = vadd.f32 %v4145_v29, %v1804_v9  ;;  %v2134_v11 = vld [vmem:[%s3655_s6 + $0x1f0] sm:$0xff] }
 0x326   : > { %2252 = vst [vmem:[%s3661_s10 + $0x1a0] sm:$0xff] %v2188_v62  ;;  %v2190_v61 = vadd.f32 %v2126_v7, %v2062_v40  ;;  %vm1935_vm7 = vcmp.gt.f32.partialorder %v1871_v43, 0.0  ;;  %v1999_v4 = vmul.f32 0.1, %v1871_v43  ;;  %vm1936_vm8 = vcmp.gt.f32.partialorder %v1872_v37, 0.0 }
 0x327   : > { %2253 = vst [vmem:[%s3661_s10 + $0x1a8] sm:$0xff] %v2189_v21  ;;  %v2000_v13 = vmul.f32 0.1, %v1872_v37  ;;  %vm1937_vm9 = vcmp.gt.f32.partialorder %v1873_v24, 0.0  ;;  %v2001_v50 = vmul.f32 0.1, %v1873_v24  ;;  %v1875_v39 = vadd.f32 %v4147_v5, %v1805_v19 }
 0x328   : > { %2254 = vst [vmem:[%s3661_s10 + $0x1b0] sm:$0xff] %v2190_v61  ;;  %v2063_v31 = vsel %vm1935_vm7, %v1871_v43, %v1999_v4  ;;  %vm1938_vm10 = vcmp.gt.f32.partialorder %v1874_v56, 0.0  ;;  %v2002_v41 = vmul.f32 0.1, %v1874_v56  ;;  %v1876_v8 = vadd.f32 %v4145_v29, %v1806_v36 }
 0x329   : > { %v2191_v48 = vadd.f32 %v2127_v57, %v2063_v31  ;;  %v2064_v27 = vsel %vm1936_vm8, %v1872_v37, %v2000_v13  ;;  %v2065_v14 = vsel %vm1937_vm9, %v1873_v24, %v2001_v50  ;;  %vm1939_vm11 = vcmp.gt.f32.partialorder %v1875_v39, 0.0 }
 0x32a   : > { %v2192_v2 = vadd.f32 %v2128_v32, %v2064_v27  ;;  %v2193_v54 = vadd.f32 %v2129_v30, %v2065_v14  ;;  %v2066_v26 = vsel %vm1938_vm10, %v1874_v56, %v2002_v41  ;;  %v2003_v20 = vmul.f32 0.1, %v1875_v39 }
 0x32b   : > { %2255 = vst [vmem:[%s3661_s10 + $0x1b8] sm:$0xff] %v2191_v48  ;;  %v2194_v18 = vadd.f32 %v2130_v3, %v2066_v26  ;;  %vm1940_vm12 = vcmp.gt.f32.partialorder %v1876_v8, 0.0  ;;  %v2004_v38 = vmul.f32 0.1, %v1876_v8  ;;  %v1877_v22 = vadd.f32 %v4147_v5, %v1807_v6 }
 0x32c   : > { %2256 = vst [vmem:[%s3661_s10 + $0x1c0] sm:$0xff] %v2192_v2  ;;  %v2067_v45 = vsel %vm1939_vm11, %v1875_v39, %v2003_v20  ;;  %v1878_v42 = vadd.f32 %v4145_v29, %v1808_v28  ;;  %v1879_v49 = vadd.f32 %v4147_v5, %v1809_v33 }
 0x32d   : > { %2257 = vst [vmem:[%s3661_s10 + $0x1c8] sm:$0xff] %v2193_v54  ;;  %v2195_v12 = vadd.f32 %v2131_v44, %v2067_v45  ;;  %v2068_v15 = vsel %vm1940_vm12, %v1876_v8, %v2004_v38  ;;  %vm1941_vm13 = vcmp.gt.f32.partialorder %v1877_v22, 0.0  ;;  %v2005_v46 = vmul.f32 0.1, %v1877_v22 }
 0x32e   : > { %2258 = vst [vmem:[%s3661_s10 + $0x1d0] sm:$0xff] %v2194_v18  ;;  %v2196_v10 = vadd.f32 %v2132_v55, %v2068_v15  ;;  %vm1942_vm14 = vcmp.gt.f32.partialorder %v1878_v42, 0.0  ;;  %v2006_v1 = vmul.f32 0.1, %v1878_v42  ;;  %vm1943_vm15 = vcmp.gt.f32.partialorder %v1879_v49, 0.0 }
 0x32f   : > { %2259 = vst [vmem:[%s3661_s10 + $0x1d8] sm:$0xff] %v2195_v12  ;;  %v2069_v29 = vsel %vm1941_vm13, %v1877_v22, %v2005_v46  ;;  %v2007_v5 = vmul.f32 0.1, %v1879_v49 }
 0x330   : > { %2260 = vst [vmem:[%s3661_s10 + $0x1e0] sm:$0xff] %v2196_v10  ;;  %v2197_v51 = vadd.f32 %v2133_v16, %v2069_v29  ;;  %v2070_v60 = vsel %vm1942_vm14, %v1878_v42, %v2006_v1 }
 0x331   : > { %v2198_v35 = vadd.f32 %v2134_v11, %v2070_v60  ;;  %v2071_v23 = vsel %vm1943_vm15, %v1879_v49, %v2007_v5 }
 0x332   : > { %2261 = vst [vmem:[%s3661_s10 + $0x1e8] sm:$0xff] %v2197_v51  ;;  %v2199_v25 = vadd.f32 %v2135_v59, %v2071_v23 }
 0x333   : > { %2262 = vst [vmem:[%s3661_s10 + $0x1f0] sm:$0xff] %v2198_v35 }
 0x334   : > { %2263 = vst [vmem:[%s3661_s10 + $0x1f8] sm:$0xff] %v2199_v25 }
 0x335 PF: > { %s4471_s8 = sld [smem:[#allocation19_spill]]  ;;  %s2278_s24 = sshll.u32 %s3661_s10, 4  ;;  %s2279_s24 = int_to_ptr.vmem [resolvable:$true] %s2278_s24 }
 0x336   : > { %s4472_s22 = sld [smem:[#allocation34_spill]]  ;;  %s2265_s9 = scalar_lea.sflag [#allocation5], %s3651_s1 }
 0x33b   : > { %s2934_s7 = sshll.u32 %s4471_s8, 9 }
 0x33c   : > { %s4473_s5 = smov %s4472_s22  ;;  %s2277_s25 = scalar_lea.hbm %s4472_s22, %s2934_s7 }
 0x33d   : > { %s2280_s4 = sshll.u32 %s2277_s25, 4  ;;  %s3254_s6 = scalar_lea.hbm %s4473_s5, 1024  ;;  %s2281_s4 = int_to_ptr.hbm [resolvable:$true] %s2280_s4 }
 0x33e   : > { %s3248_s0 = sshra.s32 %s2281_s4, 4  ;;  %s3249_s0 = int_to_ptr.hbm [resolvable:$true] %s3248_s0 }
 0x33f   : > { %s3250_s18 = scalar_lea.hbm %s3249_s0, 512  ;;  %p3255_p7 = scmp.lt.s32.totalorder %s3249_s0, %s4473_s5 }
 0x340   : > { %p3251_p6 = scmp.ne.s32.totalorder %s3249_s0, %s3250_s18  ;;  %p3256_p4 = scmp.lt.s32.totalorder %s3254_s6, %s3250_s18 }
 0x342   : > { %p3252_p8 = pnand %p3251_p6, %p3606_p11  ;;  %p3257_p9 = por %p3256_p4, %p3255_p7 }
 0x344   : > { %p3253_p13 = pneg %p3252_p8 }
 0x346   : > { %p3258_p10 = pnand %p3257_p9, %p3253_p13 }
 0x348   : > { %3261 = shalt.err (!%p3258_p10)
}
 0x349   : > { %s3403_s1 = smov 256   ;;  %s3404_s10 = smov 16  }
 0x34a   : > { %2967 = dma.vmem_to_hbm [thread:$0]  (%p3606_p11), %s2279_s24, 8192, %s2281_s4, %s2265_s9, %s3403_s1, %s3403_s1, %s3404_s10  }
 0x34b PF: > { %p2990_p12 = scmp.ge.s32.totalorder %s3392_s28, 2  ;;  %s2295_s8 = sand.u32 1, %s3340_s15  }
 0x34c   : > { %s2296_s7 = scalar_lea.sflag [#allocation5], %s2295_s8 }
 0x34d   : > { %p2984_p0 = pnand %p2990_p12, %p3617_p2 }
 0x34f   : > { %p2985_p3 = pneg %p2984_p0 }
 0x351   : > { %3335 = dma.done.wait (%p2985_p3), %s2296_s7, 8192  }
 0x352   : > { %3337 = vsyncadd (%p2985_p3), %s2296_s7, 4294959104  ;;  %s26_s28 = sadd.s32 1, %s3392_s28   ;;  %s4475_s14 = sld [smem:[#allocation17_spill]] }
 0x353   : > { %p4370_p5 = scmp.ge.s32.totalorder %s26_s28, 8   ;;  %s4476_s13 = sld [smem:[#allocation27_spill]] }
 0x354   : > { %s4477_s24 = sld [smem:[#allocation20_spill]]  ;;  %s4481_s15 = smov %s3344_s16 }
 0x355   : > { %s4478_s25 = sld [smem:[#allocation21_spill]]  ;;  %s4482_s16 = smov %s3348_s17 }
 0x356   : > { %s4479_s26 = sld [smem:[#allocation25_spill]]  ;;  %s4483_s17 = smov %s3594_s21 }
 0x357   : > { %s4480_s27 = sld [smem:[#allocation26_spill]]  ;;  %s4484_s18 = smov %s3356_s19 }
 0x358   : > { %s4485_s19 = smov %s3360_s20  ;;  %s4486_s20 = smov %s3577_s2 }
 0x359   : > { %s4487_s21 = smov %s4475_s14  ;;  %s4488_s22 = smov %s3372_s23 }
 0x35a   : > { %s4489_s23 = smov %s4476_s13  ;;  %25 = sbr.rel (!%p4370_p5) target bundleno = 19 (0x13), region = 119 }
 0x35f   :  { %2302 = vsyncpa [#allocation4], 1 }
 0x360   :  { %2304 = vsyncpa [#allocation4 + $0x1], 1 }
 0x361   :  { %2305 = vsyncpa [#allocation7], 1 }
 0x362   :  { %2307 = vsyncpa [#allocation7 + $0x1], 1 }
 0x363   :  { %2308 = vsyncpa [#allocation10], 1 }
 0x364   :  { %2310 = vsyncpa [#allocation10 + $0x1], 1 }
 0x365   :  { %2311 = vsyncpa [#allocation5], 1 }
 0x366   :  { %2313 = vsyncpa [#allocation5 + $0x1], 1 }

</bundles_post_ra>
